<compile_context>
chip_gen: v7x
topology: tpu7x:2x2x1
jax: 0.10.0
libtpu: 0.0.40
codegen_flags: <defaults>
</compile_context>

<pallas_src>
import functools

import jax
import jax.numpy as jnp
from jax.experimental import pallas as pl
from jax.experimental.pallas import tpu as pltpu

K = 7            # kernel size
C_IN = 129
C_OUT = 25
OUT_PAD = 1
LEAK = 0.622
C_IN_PAD = 144   # 129 -> multiple of 16 (bf16 sublane packing): aligned kx blocks
C_OUT_PAD = 32   # 25  -> multiple of 8: aligned per-ky Y slices, unmasked stores


def _convt_kernel(x_ref, w_ref, o_ref, xcols_ref, y_ref, acc_ref,
                  *, row, l_in, l_out):
    # x_ref:     (1, C_IN_PAD, l_in)        bf16 -- input embedded in rows of
    #            width `row` (pixel (ih,iw) at lane ih*row+iw, zeros elsewhere,
    #            channels 129..143 zero).
    # w_ref:     (K*C_OUT_PAD, K*C_IN_PAD)  bf16 -- W[(ky,co), (kx,ci)]
    # o_ref:     (1, C_OUT_PAD, l_out)      f32  -- channel-first flat output
    # xcols_ref: (K*C_IN_PAD, l_in)         bf16 scratch -- kx-im2col of x
    # y_ref:     (K*C_OUT_PAD, l_in)        f32 scratch -- matmul result
    # acc_ref:   (C_OUT_PAD, l_out)         f32 scratch -- overlap-add accumulator

    # ---- build Xcols[(kx,ci), p] = x[ci, p - kx] (static lane shifts) -------
    # The >=K-1 zero-pad columns at the end of every embedded row guarantee
    # that nothing real is shifted across a row boundary, and the first kx
    # lanes are explicitly zero-filled, so no masking is required.
    xcols_ref[0:C_IN_PAD, :] = x_ref[0]
    for kx in range(1, K):
        shifted = jnp.concatenate(
            [jnp.zeros((C_IN_PAD, kx), jnp.bfloat16),
             x_ref[0, :, : l_in - kx]],
            axis=1)
        xcols_ref[kx * C_IN_PAD:(kx + 1) * C_IN_PAD, :] = shifted

    # ---- ONE deep MXU matmul (bf16 in, f32 accumulation) --------------------
    #   Y[(ky,co), p] = sum_{kx,ci} W[(ky,co),(kx,ci)] * x[ci, p - kx]
    y_ref[...] = jnp.dot(w_ref[...], xcols_ref[...],
                         preferred_element_type=jnp.float32)
    # Keeping Y in f32 (not bf16) preserves the tight tolerance vs the
    # bf16-input f32-math reference; bf16 Y would halve this traffic if needed.

    # ---- 7-way overlap-add over ky, in place at static lane offsets ---------
    #   out[co, ky*row + p] += Y[(ky,co), p]
    # ky == 0 initializes lanes [0, l_in); the tail (incl. the output_padding
    # row) is zero-filled once, then ky = 1..K-1 accumulate in place.
    acc_ref[:, 0:l_in] = y_ref[0:C_OUT_PAD, :]
    acc_ref[:, l_in:l_out] = jnp.zeros((C_OUT_PAD, l_out - l_in), jnp.float32)
    for ky in range(1, K):
        start = ky * row
        acc_ref[:, start:start + l_in] += \
            y_ref[ky * C_OUT_PAD:(ky + 1) * C_OUT_PAD, :]

    # ---- v2 = v1 > 0 ; v3 = v1 * 0.622 ; v4 = where(v2, v1, v3) -------------
    v = acc_ref[...]
    o_ref[0] = jnp.where(v > 0, v, v * LEAK)


def pack_weight(w_torch):
    """(C_IN, C_OUT, K, K) f32 -> (K*C_OUT_PAD, K*C_IN_PAD) bf16 = W[(ky,co),(kx,ci)].

    Done once outside the per-call path (weights are static for a module).
    """
    w = jnp.transpose(w_torch, (2, 1, 3, 0))                      # (ky, co, kx, ci)
    w = jnp.pad(w, ((0, 0), (0, C_OUT_PAD - C_OUT),
                    (0, 0), (0, C_IN_PAD - C_IN)))
    return w.reshape(K * C_OUT_PAD, K * C_IN_PAD).astype(jnp.bfloat16)


@jax.jit
def conv_transpose_leaky(x_nchw, w_packed):
    """x_nchw: (N, C_IN, H, W) float32; w_packed: output of pack_weight."""
    n, c_in, h_in, w_in = x_nchw.shape
    assert c_in == C_IN
    h_out = h_in + K - 1 + OUT_PAD
    w_out = w_in + K - 1 + OUT_PAD

    # Flat-embedding row width: row >= w_in + K - 1 guarantees the kx lane
    # shifts never leak across row boundaries (row - w_in = K - 1 + OUT_PAD).
    row = w_out
    assert row - w_in >= K - 1
    l_in = h_in * row
    l_out = h_out * row

    # (N, C_IN, H, W) -> pad channels to C_IN_PAD and W to `row`, flatten
    # spatial, cast bf16.  Only ~1x the raw input bytes ever hits HBM.
    x_emb = jnp.pad(
        x_nchw, ((0, 0), (0, C_IN_PAD - C_IN), (0, 0), (0, row - w_in)))
    x_emb = x_emb.reshape(n, C_IN_PAD, l_in).astype(jnp.bfloat16)

    kernel = functools.partial(_convt_kernel, row=row, l_in=l_in, l_out=l_out)

    out_flat = pl.pallas_call(
        kernel,
        out_shape=jax.ShapeDtypeStruct((n, C_OUT_PAD, l_out), jnp.float32),
        grid_spec=pltpu.PrefetchScalarGridSpec(
            num_scalar_prefetch=0,
            grid=(n,),
            in_specs=[
                pl.BlockSpec((1, C_IN_PAD, l_in), lambda b: (b, 0, 0)),
                pl.BlockSpec((K * C_OUT_PAD, K * C_IN_PAD), lambda b: (0, 0)),
            ],
            out_specs=pl.BlockSpec((1, C_OUT_PAD, l_out), lambda b: (b, 0, 0)),
            scratch_shapes=[
                pltpu.VMEM((K * C_IN_PAD, l_in), jnp.bfloat16),   # Xcols
                pltpu.VMEM((K * C_OUT_PAD, l_in), jnp.float32),   # Y
                pltpu.VMEM((C_OUT_PAD, l_out), jnp.float32),      # accumulator
            ],
        ),
        compiler_params=pltpu.CompilerParams(
            dimension_semantics=("parallel",),   # batch is independent -> 2 TCs on v7x
        ),
    )(x_emb, w_packed)

    # (N, C_OUT_PAD, h_out*row) -> (N, C_OUT_PAD, h_out, w_out) -> crop channels.
    out = out_flat.reshape(n, C_OUT_PAD, h_out, w_out)[:, :C_OUT]
    return out


def _reference(x_nchw, w_torch):
    """Pure-JAX reference (flip + full-conv formulation, f32)."""
    n, _, h_in, w_in = x_nchw.shape
    h_out = h_in + K - 1 + OUT_PAD
    w_out = w_in + K - 1 + OUT_PAD
    x_nhwc = jnp.transpose(x_nchw, (0, 2, 3, 1))
    x_pad = jnp.pad(
        x_nhwc,
        ((0, 0), (K - 1, K - 1 + OUT_PAD), (K - 1, K - 1 + OUT_PAD), (0, 0)),
    )
    w_flip = w_torch[:, :, ::-1, ::-1]
    w_khwc = jnp.transpose(w_flip, (2, 3, 0, 1))
    acc = jnp.zeros((n, h_out, w_out, C_OUT), jnp.float32)
    for ky in range(K):
        for kx in range(K):
            patch = x_pad[:, ky:ky + h_out, kx:kx + w_out, :]
            acc = acc + jnp.einsum("nhwc,co->nhwo", patch, w_khwc[ky, kx])
    y = jnp.where(acc > 0, acc, acc * LEAK)
    return jnp.transpose(y, (0, 3, 1, 2))


if __name__ == "__main__":
    key = jax.random.PRNGKey(0)
    kx_key, kw_key = jax.random.split(key)

    # Small shapes consistent with the module: in_channels must be 129.
    N, H, W = 2, 8, 8
    x = jax.random.normal(kx_key, (N, C_IN, H, W), dtype=jnp.float32)

    # Deterministic ConvTranspose2d weight, shape (C_IN, C_OUT, K, K),
    # uniform in [-bound, bound] like PyTorch's default init.
    fan_in = C_IN * K * K
    bound = 1.0 / (fan_in ** 0.5)
    w = jax.random.uniform(kw_key, (C_IN, C_OUT, K, K),
                           dtype=jnp.float32, minval=-bound, maxval=bound)

    w_packed = pack_weight(w)                 # one-time weight repack
    out = conv_transpose_leaky(x, w_packed)
    out = jax.block_until_ready(out)
    assert out.shape == (N, C_OUT, H + K - 1 + OUT_PAD, W + K - 1 + OUT_PAD)

    # Structural check: reference fed the same bf16-rounded inputs (f32 math);
    # only the accumulation order differs from the MXU, so tolerance is tight.
    x_b = x.astype(jnp.bfloat16).astype(jnp.float32)
    w_b = w.astype(jnp.bfloat16).astype(jnp.float32)
    ref_b = _reference(x_b, w_b)
    assert jnp.allclose(out, ref_b, rtol=1e-3, atol=1e-3)

    # End-to-end accuracy vs full-precision math (bf16 MXU inputs, f32 accum).
    ref = _reference(x, w)
    assert jnp.allclose(out, ref, rtol=2e-2, atol=2e-2)

    print("KERNEL_OK")
</pallas_src>

<mosaic_0001>
module attributes {stable_mosaic.version = 11 : i64} {
  func.func @_convt_kernel(%arg0: i32, %arg1: memref<1x144x120xbf16, #tpu.memory_space<vmem>>, %arg2: memref<224x1008xbf16, #tpu.memory_space<vmem>>, %arg3: memref<1x32x225xf32, #tpu.memory_space<vmem>>, %arg4: memref<1008x120xbf16, #tpu.memory_space<vmem>>, %arg5: memref<224x120xf32, #tpu.memory_space<vmem>>, %arg6: memref<32x225xf32, #tpu.memory_space<vmem>>) attributes {dimension_semantics = [#tpu.dimension_semantics<parallel>], iteration_bounds = array<i64: 2>, scalar_prefetch = 0 : i64, scratch_operands = 3 : i64, tpu.core_type = #tpu.core_type<tc>, window_params = [{transform_indices = @transform_0, window_bounds = array<i64: 1, 144, 120>}, {pipeline_mode = #tpu.pipeline_mode<synchronous>, transform_indices = @transform_1, window_bounds = array<i64: 224, 1008>}, {transform_indices = @transform_2, window_bounds = array<i64: 1, 32, 225>}]} {
    %c0 = arith.constant 0 : index
    %c0_0 = arith.constant 0 : index
    %c0_1 = arith.constant 0 : index
    %0 = vector.load %arg1[%c0, %c0_0, %c0_1] : memref<1x144x120xbf16, #tpu.memory_space<vmem>>, vector<1x144x120xbf16>
    %1 = vector.shape_cast %0 : vector<1x144x120xbf16> to vector<144x120xbf16>
    %c0_2 = arith.constant 0 : index
    %c0_3 = arith.constant 0 : index
    %2 = vector.load %arg4[%c0_2, %c0_3] : memref<1008x120xbf16, #tpu.memory_space<vmem>>, vector<144x120xbf16>
    tpu.vector_store %arg4[%c0_2, %c0_3], %1 {strides = array<i32>} : memref<1008x120xbf16, #tpu.memory_space<vmem>>, vector<144x120xbf16>,
    %cst = arith.constant 0.000000e+00 : bf16
    %3 = vector.broadcast %cst : bf16 to vector<144x1xbf16>
    %c0_4 = arith.constant 0 : index
    %c0_5 = arith.constant 0 : index
    %c0_6 = arith.constant 0 : index
    %4 = vector.load %arg1[%c0_4, %c0_5, %c0_6] : memref<1x144x120xbf16, #tpu.memory_space<vmem>>, vector<1x144x119xbf16>
    %5 = vector.shape_cast %4 : vector<1x144x119xbf16> to vector<144x119xbf16>
    %6 = tpu.concatenate %3, %5 in 1 : vector<144x1xbf16>, vector<144x119xbf16> -> vector<144x120xbf16>
    %c144 = arith.constant 144 : index
    %c0_7 = arith.constant 0 : index
    %7 = vector.load %arg4[%c144, %c0_7] : memref<1008x120xbf16, #tpu.memory_space<vmem>>, vector<144x120xbf16>
    tpu.vector_store %arg4[%c144, %c0_7], %6 {strides = array<i32>} : memref<1008x120xbf16, #tpu.memory_space<vmem>>, vector<144x120xbf16>,
    %cst_8 = arith.constant 0.000000e+00 : bf16
    %8 = vector.broadcast %cst_8 : bf16 to vector<144x2xbf16>
    %c0_9 = arith.constant 0 : index
    %c0_10 = arith.constant 0 : index
    %c0_11 = arith.constant 0 : index
    %9 = vector.load %arg1[%c0_9, %c0_10, %c0_11] : memref<1x144x120xbf16, #tpu.memory_space<vmem>>, vector<1x144x118xbf16>
    %10 = vector.shape_cast %9 : vector<1x144x118xbf16> to vector<144x118xbf16>
    %11 = tpu.concatenate %8, %10 in 1 : vector<144x2xbf16>, vector<144x118xbf16> -> vector<144x120xbf16>
    %c288 = arith.constant 288 : index
    %c0_12 = arith.constant 0 : index
    %12 = vector.load %arg4[%c288, %c0_12] : memref<1008x120xbf16, #tpu.memory_space<vmem>>, vector<144x120xbf16>
    tpu.vector_store %arg4[%c288, %c0_12], %11 {strides = array<i32>} : memref<1008x120xbf16, #tpu.memory_space<vmem>>, vector<144x120xbf16>,
    %cst_13 = arith.constant 0.000000e+00 : bf16
    %13 = vector.broadcast %cst_13 : bf16 to vector<144x3xbf16>
    %c0_14 = arith.constant 0 : index
    %c0_15 = arith.constant 0 : index
    %c0_16 = arith.constant 0 : index
    %14 = vector.load %arg1[%c0_14, %c0_15, %c0_16] : memref<1x144x120xbf16, #tpu.memory_space<vmem>>, vector<1x144x117xbf16>
    %15 = vector.shape_cast %14 : vector<1x144x117xbf16> to vector<144x117xbf16>
    %16 = tpu.concatenate %13, %15 in 1 : vector<144x3xbf16>, vector<144x117xbf16> -> vector<144x120xbf16>
    %c432 = arith.constant 432 : index
    %c0_17 = arith.constant 0 : index
    %17 = vector.load %arg4[%c432, %c0_17] : memref<1008x120xbf16, #tpu.memory_space<vmem>>, vector<144x120xbf16>
    tpu.vector_store %arg4[%c432, %c0_17], %16 {strides = array<i32>} : memref<1008x120xbf16, #tpu.memory_space<vmem>>, vector<144x120xbf16>,
    %cst_18 = arith.constant 0.000000e+00 : bf16
    %18 = vector.broadcast %cst_18 : bf16 to vector<144x4xbf16>
    %c0_19 = arith.constant 0 : index
    %c0_20 = arith.constant 0 : index
    %c0_21 = arith.constant 0 : index
    %19 = vector.load %arg1[%c0_19, %c0_20, %c0_21] : memref<1x144x120xbf16, #tpu.memory_space<vmem>>, vector<1x144x116xbf16>
    %20 = vector.shape_cast %19 : vector<1x144x116xbf16> to vector<144x116xbf16>
    %21 = tpu.concatenate %18, %20 in 1 : vector<144x4xbf16>, vector<144x116xbf16> -> vector<144x120xbf16>
    %c576 = arith.constant 576 : index
    %c0_22 = arith.constant 0 : index
    %22 = vector.load %arg4[%c576, %c0_22] : memref<1008x120xbf16, #tpu.memory_space<vmem>>, vector<144x120xbf16>
    tpu.vector_store %arg4[%c576, %c0_22], %21 {strides = array<i32>} : memref<1008x120xbf16, #tpu.memory_space<vmem>>, vector<144x120xbf16>,
    %cst_23 = arith.constant 0.000000e+00 : bf16
    %23 = vector.broadcast %cst_23 : bf16 to vector<144x5xbf16>
    %c0_24 = arith.constant 0 : index
    %c0_25 = arith.constant 0 : index
    %c0_26 = arith.constant 0 : index
    %24 = vector.load %arg1[%c0_24, %c0_25, %c0_26] : memref<1x144x120xbf16, #tpu.memory_space<vmem>>, vector<1x144x115xbf16>
    %25 = vector.shape_cast %24 : vector<1x144x115xbf16> to vector<144x115xbf16>
    %26 = tpu.concatenate %23, %25 in 1 : vector<144x5xbf16>, vector<144x115xbf16> -> vector<144x120xbf16>
    %c720 = arith.constant 720 : index
    %c0_27 = arith.constant 0 : index
    %27 = vector.load %arg4[%c720, %c0_27] : memref<1008x120xbf16, #tpu.memory_space<vmem>>, vector<144x120xbf16>
    tpu.vector_store %arg4[%c720, %c0_27], %26 {strides = array<i32>} : memref<1008x120xbf16, #tpu.memory_space<vmem>>, vector<144x120xbf16>,
    %cst_28 = arith.constant 0.000000e+00 : bf16
    %28 = vector.broadcast %cst_28 : bf16 to vector<144x6xbf16>
    %c0_29 = arith.constant 0 : index
    %c0_30 = arith.constant 0 : index
    %c0_31 = arith.constant 0 : index
    %29 = vector.load %arg1[%c0_29, %c0_30, %c0_31] : memref<1x144x120xbf16, #tpu.memory_space<vmem>>, vector<1x144x114xbf16>
    %30 = vector.shape_cast %29 : vector<1x144x114xbf16> to vector<144x114xbf16>
    %31 = tpu.concatenate %28, %30 in 1 : vector<144x6xbf16>, vector<144x114xbf16> -> vector<144x120xbf16>
    %c864 = arith.constant 864 : index
    %c0_32 = arith.constant 0 : index
    %32 = vector.load %arg4[%c864, %c0_32] : memref<1008x120xbf16, #tpu.memory_space<vmem>>, vector<144x120xbf16>
    tpu.vector_store %arg4[%c864, %c0_32], %31 {strides = array<i32>} : memref<1008x120xbf16, #tpu.memory_space<vmem>>, vector<144x120xbf16>,
    %c0_33 = arith.constant 0 : index
    %c0_34 = arith.constant 0 : index
    %33 = vector.load %arg2[%c0_33, %c0_34] : memref<224x1008xbf16, #tpu.memory_space<vmem>>, vector<224x1008xbf16>
    %c0_35 = arith.constant 0 : index
    %c0_36 = arith.constant 0 : index
    %34 = vector.load %arg4[%c0_35, %c0_36] : memref<1008x120xbf16, #tpu.memory_space<vmem>>, vector<1008x120xbf16>
    %cst_37 = arith.constant dense<0.000000e+00> : vector<224x120xf32>
    %35 = tpu.matmul %33, %34, %cst_37 {dimension_numbers = #tpu.dot_dimension_numbers<[1], [0], [0], [1], [0, 0, 1, 1], [], []>} : vector<224x1008xbf16>, vector<1008x120xbf16>, vector<224x120xf32> -> vector<224x120xf32>
    %c0_38 = arith.constant 0 : index
    %c0_39 = arith.constant 0 : index
    %36 = vector.load %arg5[%c0_38, %c0_39] : memref<224x120xf32, #tpu.memory_space<vmem>>, vector<224x120xf32>
    tpu.vector_store %arg5[%c0_38, %c0_39], %35 {strides = array<i32>} : memref<224x120xf32, #tpu.memory_space<vmem>>, vector<224x120xf32>,
    %c0_40 = arith.constant 0 : index
    %c0_41 = arith.constant 0 : index
    %37 = vector.load %arg5[%c0_40, %c0_41] : memref<224x120xf32, #tpu.memory_space<vmem>>, vector<32x120xf32>
    %c0_42 = arith.constant 0 : index
    %c0_43 = arith.constant 0 : index
    %38 = vector.load %arg6[%c0_42, %c0_43] : memref<32x225xf32, #tpu.memory_space<vmem>>, vector<32x120xf32>
    tpu.vector_store %arg6[%c0_42, %c0_43], %37 {strides = array<i32>} : memref<32x225xf32, #tpu.memory_space<vmem>>, vector<32x120xf32>,
    %cst_44 = arith.constant 0.000000e+00 : f32
    %39 = vector.broadcast %cst_44 : f32 to vector<32x105xf32>
    %c0_45 = arith.constant 0 : index
    %c120 = arith.constant 120 : index
    %40 = vector.load %arg6[%c0_45, %c120] : memref<32x225xf32, #tpu.memory_space<vmem>>, vector<32x105xf32>
    tpu.vector_store %arg6[%c0_45, %c120], %39 {strides = array<i32>} : memref<32x225xf32, #tpu.memory_space<vmem>>, vector<32x105xf32>,
    %c0_46 = arith.constant 0 : index
    %c15 = arith.constant 15 : index
    %41 = vector.load %arg6[%c0_46, %c15] : memref<32x225xf32, #tpu.memory_space<vmem>>, vector<32x120xf32>
    %c32 = arith.constant 32 : index
    %c0_47 = arith.constant 0 : index
    %42 = vector.load %arg5[%c32, %c0_47] : memref<224x120xf32, #tpu.memory_space<vmem>>, vector<32x120xf32>
    %43 = arith.addf %41, %42 : vector<32x120xf32>
    %c0_48 = arith.constant 0 : index
    %c15_49 = arith.constant 15 : index
    %44 = vector.load %arg6[%c0_48, %c15_49] : memref<32x225xf32, #tpu.memory_space<vmem>>, vector<32x120xf32>
    tpu.vector_store %arg6[%c0_48, %c15_49], %43 {strides = array<i32>} : memref<32x225xf32, #tpu.memory_space<vmem>>, vector<32x120xf32>,
    %c0_50 = arith.constant 0 : index
    %c30 = arith.constant 30 : index
    %45 = vector.load %arg6[%c0_50, %c30] : memref<32x225xf32, #tpu.memory_space<vmem>>, vector<32x120xf32>
    %c64 = arith.constant 64 : index
    %c0_51 = arith.constant 0 : index
    %46 = vector.load %arg5[%c64, %c0_51] : memref<224x120xf32, #tpu.memory_space<vmem>>, vector<32x120xf32>
    %47 = arith.addf %45, %46 : vector<32x120xf32>
    %c0_52 = arith.constant 0 : index
    %c30_53 = arith.constant 30 : index
    %48 = vector.load %arg6[%c0_52, %c30_53] : memref<32x225xf32, #tpu.memory_space<vmem>>, vector<32x120xf32>
    tpu.vector_store %arg6[%c0_52, %c30_53], %47 {strides = array<i32>} : memref<32x225xf32, #tpu.memory_space<vmem>>, vector<32x120xf32>,
    %c0_54 = arith.constant 0 : index
    %c45 = arith.constant 45 : index
    %49 = vector.load %arg6[%c0_54, %c45] : memref<32x225xf32, #tpu.memory_space<vmem>>, vector<32x120xf32>
    %c96 = arith.constant 96 : index
    %c0_55 = arith.constant 0 : index
    %50 = vector.load %arg5[%c96, %c0_55] : memref<224x120xf32, #tpu.memory_space<vmem>>, vector<32x120xf32>
    %51 = arith.addf %49, %50 : vector<32x120xf32>
    %c0_56 = arith.constant 0 : index
    %c45_57 = arith.constant 45 : index
    %52 = vector.load %arg6[%c0_56, %c45_57] : memref<32x225xf32, #tpu.memory_space<vmem>>, vector<32x120xf32>
    tpu.vector_store %arg6[%c0_56, %c45_57], %51 {strides = array<i32>} : memref<32x225xf32, #tpu.memory_space<vmem>>, vector<32x120xf32>,
    %c0_58 = arith.constant 0 : index
    %c60 = arith.constant 60 : index
    %53 = vector.load %arg6[%c0_58, %c60] : memref<32x225xf32, #tpu.memory_space<vmem>>, vector<32x120xf32>
    %c128 = arith.constant 128 : index
    %c0_59 = arith.constant 0 : index
    %54 = vector.load %arg5[%c128, %c0_59] : memref<224x120xf32, #tpu.memory_space<vmem>>, vector<32x120xf32>
    %55 = arith.addf %53, %54 : vector<32x120xf32>
    %c0_60 = arith.constant 0 : index
    %c60_61 = arith.constant 60 : index
    %56 = vector.load %arg6[%c0_60, %c60_61] : memref<32x225xf32, #tpu.memory_space<vmem>>, vector<32x120xf32>
    tpu.vector_store %arg6[%c0_60, %c60_61], %55 {strides = array<i32>} : memref<32x225xf32, #tpu.memory_space<vmem>>, vector<32x120xf32>,
    %c0_62 = arith.constant 0 : index
    %c75 = arith.constant 75 : index
    %57 = vector.load %arg6[%c0_62, %c75] : memref<32x225xf32, #tpu.memory_space<vmem>>, vector<32x120xf32>
    %c160 = arith.constant 160 : index
    %c0_63 = arith.constant 0 : index
    %58 = vector.load %arg5[%c160, %c0_63] : memref<224x120xf32, #tpu.memory_space<vmem>>, vector<32x120xf32>
    %59 = arith.addf %57, %58 : vector<32x120xf32>
    %c0_64 = arith.constant 0 : index
    %c75_65 = arith.constant 75 : index
    %60 = vector.load %arg6[%c0_64, %c75_65] : memref<32x225xf32, #tpu.memory_space<vmem>>, vector<32x120xf32>
    tpu.vector_store %arg6[%c0_64, %c75_65], %59 {strides = array<i32>} : memref<32x225xf32, #tpu.memory_space<vmem>>, vector<32x120xf32>,
    %c0_66 = arith.constant 0 : index
    %c90 = arith.constant 90 : index
    %61 = vector.load %arg6[%c0_66, %c90] : memref<32x225xf32, #tpu.memory_space<vmem>>, vector<32x120xf32>
    %c192 = arith.constant 192 : index
    %c0_67 = arith.constant 0 : index
    %62 = vector.load %arg5[%c192, %c0_67] : memref<224x120xf32, #tpu.memory_space<vmem>>, vector<32x120xf32>
    %63 = arith.addf %61, %62 : vector<32x120xf32>
    %c0_68 = arith.constant 0 : index
    %c90_69 = arith.constant 90 : index
    %64 = vector.load %arg6[%c0_68, %c90_69] : memref<32x225xf32, #tpu.memory_space<vmem>>, vector<32x120xf32>
    tpu.vector_store %arg6[%c0_68, %c90_69], %63 {strides = array<i32>} : memref<32x225xf32, #tpu.memory_space<vmem>>, vector<32x120xf32>,
    %c0_70 = arith.constant 0 : index
    %c0_71 = arith.constant 0 : index
    %65 = vector.load %arg6[%c0_70, %c0_71] : memref<32x225xf32, #tpu.memory_space<vmem>>, vector<32x225xf32>
    %cst_72 = arith.constant 0.000000e+00 : f32
    %66 = vector.broadcast %cst_72 : f32 to vector<32x225xf32>
    %67 = arith.cmpf ogt, %65, %66 : vector<32x225xf32>
    %cst_73 = arith.constant 6.220000e-01 : f32
    %68 = vector.broadcast %cst_73 : f32 to vector<32x225xf32>
    %69 = arith.mulf %65, %68 : vector<32x225xf32>
    %70 = arith.select %67, %65, %69 : vector<32x225xi1>, vector<32x225xf32>
    %c0_74 = arith.constant 0 : index
    %c0_75 = arith.constant 0 : index
    %c0_76 = arith.constant 0 : index
    %71 = vector.load %arg3[%c0_74, %c0_75, %c0_76] : memref<1x32x225xf32, #tpu.memory_space<vmem>>, vector<1x32x225xf32>
    %72 = vector.shape_cast %71 : vector<1x32x225xf32> to vector<32x225xf32>
    %73 = vector.shape_cast %70 : vector<32x225xf32> to vector<1x32x225xf32>
    tpu.vector_store %arg3[%c0_74, %c0_75, %c0_76], %73 {strides = array<i32>} : memref<1x32x225xf32, #tpu.memory_space<vmem>>, vector<1x32x225xf32>,
    return
  }
  func.func @transform_0(%arg0: i32) -> (i32, i32, i32) {
    %c0_i32 = arith.constant 0 : i32
    %c0_i32_0 = arith.constant 0 : i32
    %c0_i32_1 = arith.constant 0 : i32
    return %arg0, %c0_i32, %c0_i32_0 : i32, i32, i32
  }
  func.func @transform_1(%arg0: i32) -> (i32, i32) {
    %c0_i32 = arith.constant 0 : i32
    %c0_i32_0 = arith.constant 0 : i32
    %c0_i32_1 = arith.constant 0 : i32
    return %c0_i32, %c0_i32_0 : i32, i32
  }
  func.func @transform_2(%arg0: i32) -> (i32, i32, i32) {
    %c0_i32 = arith.constant 0 : i32
    %c0_i32_0 = arith.constant 0 : i32
    %c0_i32_1 = arith.constant 0 : i32
    return %arg0, %c0_i32, %c0_i32_0 : i32, i32, i32
  }
}

</mosaic_0001>

<bundles_post_ra>
// kernel: conv_transpose_leaky.1
= control target key start
LH: loop header
LB: loop body
LE: loop exit
PB: predicated region body
PF: predicated region fallthrough
CT: control target
= control target key end

     0   :  { %s3320_s9 = smov 0   ;;  %s4158_s0 = inlined_call_operand.vmem [shape: bf16[2,144,120], index: 0, kind: input, shape index: {}]   ;;  %s4159_s1 = inlined_call_operand.vmem [shape: bf16[224,1008], index: 1, kind: input, shape index: {}]   ;;  %s4160_s2 = inlined_call_operand.vmem [shape: f32[2,32,225], index: 2, kind: output, shape index: {}]  }
   0x1 LB: > { %s2697_s10 = sadd.s32 4294967295, %s3289_s9   ;;  %p2701_p0 = scmp.ge.s32.totalorder %s3289_s9, 1  ;;  %s3289_s9 = sphi %s3320_s9, %s12_s9  }
   0x2   : > { %p112_p1 = scmp.lt.s32.totalorder %s3289_s9, 3 }
   0x4   : > { %p113_p2 = pnand %p2701_p0, %p112_p1 }
   0x5   : > { %p134_p3 = scmp.lt.s32.totalorder (!%p113_p2), %s2697_s10, 1  ;;  %s3291_s15 = smov (!%p113_p2), 1   ;;  %vm217_vm0 = vcmask (!%p113_p2), 982016   ;;  %v3421_v45 = vld [vmem:[%s4159_s1] sm:$0xff] (!%p113_p2)  ;;  %v3432_v47 = vld [vmem:[%s4159_s1 + $0x8] sm:$0xff] (!%p113_p2)  ;;  %vm308_vm1 = vcmask (!%p113_p2), 7168  }
   0x6   : > { %116 = sbr.rel (%p113_p2) target bundleno = 759 (0x2f7), region = 28  ;;  %s3292_s16 = smov (!%p113_p2), 2   ;;  %v3427_v46 = vld [vmem:[%s4159_s1 + $0x20] sm:$0xff] (!%p113_p2)  ;;  %v3444_v51 = vld [vmem:[%s4159_s1 + $0x28] sm:$0xff] (!%p113_p2)  ;;  %vm427_vm2 = vcmask (!%p113_p2), 15360   ;;  %vm545_vm3 = vcmask (!%p113_p2), 23552  }
   0x7   : > { %s3293_s17 = smov (!%p113_p2), 3   ;;  %s3294_s18 = smov (!%p113_p2), 5   ;;  %v2768_v49 = vcombine.low (!%p113_p2), %v3421_v45, %v3427_v46  ;;  %v2769_v50 = vcombine.high (!%p113_p2), %v3421_v45, %v3427_v46  ;;  %v2770_v53 = vcombine.low (!%p113_p2), %v3432_v47, %v3444_v51  ;;  %v2771_v54 = vcombine.high (!%p113_p2), %v3432_v47, %v3444_v51  ;;  %v953_v47 = vld [vmem:[%s4159_s1 + $0x88] sm:$0xff] (!%p113_p2) }
   0x8   : > { %s3295_s19 = smov (!%p113_p2), 4   ;;  %s3296_s20 = smov (!%p113_p2), 6   ;;  %vm781_vm4 = vcmask (!%p113_p2), 39936   ;;  %vm663_vm5 = vcmask (!%p113_p2), 31744   ;;  %vm899_vm6 = vcmask (!%p113_p2), 48128   ;;  %vm1657_vm7 = vcmask (!%p113_p2), 916480  }
   0x9   : > { %1732 = vmatprep.mubr.bf16.mxu0 (!%p113_p2), %v2769_v50  ;;  %1877 = vmatprep.mubr.bf16.mxu1 (!%p113_p2), %v2771_v54  ;;  %vm2318_vm8 = vcmask (!%p113_p2), 793600   ;;  %vm2316_vm9 = vcmask (!%p113_p2), 1048512   ;;  %s3300_s12 = smov (!%p113_p2), 30   ;;  %s3301_s13 = smov (!%p113_p2), 45   ;;  %vm2362_vm10 = vcmask (!%p113_p2), 1047672   ;;  %vm2364_vm11 = vcmask (!%p113_p2), 56320  }
   0xa   : > { %vm2408_vm12 = vcmask (!%p113_p2), 1047792   ;;  %vm2410_vm13 = vcmask (!%p113_p2), 179200   ;;  %vm2454_vm14 = vcmask (!%p113_p2), 1047912   ;;  %vm2456_vm15 = vcmask (!%p113_p2), 302080  }
   0xd   : > { %s4162_s10 = smov (!%p134_p3, %s2697_s10), 1 }
   0xe   : > { %s3197_s11 = smul.u32 72, %s4162_s10 }
  0x10   : > { %s3334_s14 = scalar_lea.vmem %s4158_s0, %s3197_s11  ;;  %s3299_s11 = smov 15  }
  0x11   : > { %v3220_v0 = vld [vmem:[%s3334_s14] sm:$0xff]   ;;  %v3221_v1 = vld [vmem:[%s3334_s14 + $0x38] sm:$0xff]   ;;  %v3222_v2 = vld [vmem:[%s3334_s14 + $0x30] sm:$0xff]  }
  0x12   : > { %290 = vrot.lane.b32.xlu0 %v3220_v0, %s3291_s15  ;;  %304 = vrot.lane.b32.xlu1 %v3221_v1, %s3291_s15  ;;  %v3223_v3 = vld [vmem:[%s3334_s14 + $0x8] sm:$0xff]   ;;  %v3224_v4 = vld [vmem:[%s3334_s14 + $0x38] sm:$0xff]  }
  0x13   : > { %v3225_v5 = vld [vmem:[%s3334_s14 + $0x40] sm:$0xff]   ;;  %v3226_v6 = vld [vmem:[%s3334_s14 + $0x10] sm:$0xff]   ;;  %v3229_v9 = vld [vmem:[%s3334_s14 + $0x18] sm:$0xff]  }
  0x14   : > { %v3227_v7 = vld [vmem:[%s3334_s14 + $0x40] sm:$0xff]   ;;  %v3231_v11 = vld [vmem:[%s3334_s14 + $0x8] sm:$0xff]   ;;  %v3234_v14 = vld [vmem:[%s3334_s14 + $0x10] sm:$0xff]  }
  0x15   : > { %v3228_v8 = vld [vmem:[%s3334_s14] sm:$0xff]   ;;  %v3233_v13 = vld [vmem:[%s3334_s14 + $0x8] sm:$0xff]   ;;  %v3236_v16 = vld [vmem:[%s3334_s14 + $0x10] sm:$0xff]  }
  0x16   : > { %421 = vrot.lane.b32.xlu0 %v3222_v2, %s3292_s16  ;;  %292 = vrot.lane.b32.xlu1 %v3223_v3, %s3291_s15  ;;  %v3230_v10 = vld [vmem:[%s3334_s14] sm:$0xff]   ;;  %v3235_v15 = vld [vmem:[%s3334_s14 + $0x28] sm:$0xff]  }
  0x17   : > { %v3232_v12 = vld [vmem:[%s3334_s14 + $0x20] sm:$0xff]   ;;  %v3237_v17 = vld [vmem:[%s3334_s14 + $0x18] sm:$0xff]   ;;  %v3238_v18 = vld [vmem:[%s3334_s14 + $0x30] sm:$0xff]  }
  0x18   : > { %v3239_v19 = vld [vmem:[%s3334_s14 + $0x18] sm:$0xff]   ;;  %v3240_v20 = vld [vmem:[%s3334_s14 + $0x20] sm:$0xff]   ;;  %v3242_v22 = vld [vmem:[%s3334_s14 + $0x28] sm:$0xff]  }
  0x19   : > { %v3241_v21 = vld [vmem:[%s3334_s14 + $0x20] sm:$0xff]   ;;  %v3243_v23 = vld [vmem:[%s3334_s14 + $0x18] sm:$0xff]   ;;  %v3245_v27 = vld [vmem:[%s3334_s14 + $0x28] sm:$0xff]  }
  0x1a   : > { %423 = vrot.lane.b32.xlu0 %v3224_v4, %s3292_s16  ;;  %306 = vrot.lane.b32.xlu1 %v3225_v5, %s3291_s15  ;;  %v3263_v24 = vld [vmem:[%s3334_s14 + $0x40] sm:$0xff]   ;;  %v3268_v28 = vld [vmem:[%s3334_s14 + $0x8] sm:$0xff]  }
  0x1b   : > { %v3264_v25 = vld [vmem:[%s3334_s14] sm:$0xff]   ;;  %226 = vst.msk [vmem:[#allocation2 + $0x40] sm:$0xff] %vm217_vm0, %v3263_v24  ;;  %v3269_v29 = vld [vmem:[%s3334_s14 + $0x10] sm:$0xff]   ;;  %219 = vst.msk [vmem:[#allocation2 + $0x8] sm:$0xff] %vm217_vm0, %v3268_v28 }
  0x1c   : > { %v3244_v26 = vld [vmem:[%s3334_s14 + $0x20] sm:$0xff]   ;;  %218 = vst.msk [vmem:[#allocation2] sm:$0xff] %vm217_vm0, %v3264_v25  ;;  %v3246_v30 = vld [vmem:[%s3334_s14 + $0x30] sm:$0xff]   ;;  %v3247_v31 = vld [vmem:[%s3334_s14 + $0x38] sm:$0xff]  }
  0x1d   : > { %220 = vst.msk [vmem:[#allocation2 + $0x10] sm:$0xff] %vm217_vm0, %v3269_v29  ;;  %v3272_v34 = vld [vmem:[%s3334_s14 + $0x18] sm:$0xff]   ;;  %v3248_v35 = vld [vmem:[%s3334_s14 + $0x40] sm:$0xff]   ;;  %v3250_v38 = vld [vmem:[%s3334_s14 + $0x28] sm:$0xff]  }
  0x1e   : > { %294 = vrot.lane.b32.xlu0 %v3226_v6, %s3291_s15  ;;  %425 = vrot.lane.b32.xlu1 %v3227_v7, %s3292_s16  ;;  %v3249_v36 = vld [vmem:[%s3334_s14 + $0x20] sm:$0xff]   ;;  %221 = vst.msk [vmem:[#allocation2 + $0x18] sm:$0xff] %vm217_vm0, %v3272_v34  ;;  %v3279_v40 = vld [vmem:[%s3334_s14 + $0x28] sm:$0xff]  }
  0x1f   : > { %v3275_v37 = vld [vmem:[%s3334_s14 + $0x20] sm:$0xff]   ;;  %v3252_v41 = vld [vmem:[%s3334_s14 + $0x28] sm:$0xff]   ;;  %v3253_v42 = vld [vmem:[%s3334_s14 + $0x30] sm:$0xff]   ;;  %223 = vst.msk [vmem:[#allocation2 + $0x28] sm:$0xff] %vm217_vm0, %v3279_v40 }
  0x20   : > { %222 = vst.msk [vmem:[#allocation2 + $0x20] sm:$0xff] %vm217_vm0, %v3275_v37  ;;  %v3251_v39 = vld [vmem:[%s3334_s14] sm:$0xff]   ;;  %v3281_v43 = vld [vmem:[%s3334_s14 + $0x30] sm:$0xff]   ;;  %v3282_v44 = vld [vmem:[%s3334_s14 + $0x38] sm:$0xff]  }
  0x21   : > { %224 = vst.msk [vmem:[#allocation2 + $0x30] sm:$0xff] %vm217_vm0, %v3281_v43  ;;  %v3254_v48 = vld [vmem:[%s3334_s14 + $0x8] sm:$0xff]   ;;  %225 = vst.msk [vmem:[#allocation2 + $0x38] sm:$0xff] %vm217_vm0, %v3282_v44  ;;  %v3255_v52 = vld [vmem:[%s3334_s14 + $0x30] sm:$0xff]  }
  0x22   : > { %409 = vrot.lane.b32.xlu0 %v3228_v8, %s3292_s16  ;;  %296 = vrot.lane.b32.xlu1 %v3229_v9, %s3291_s15  ;;  %v1056_v32 = vld [vmem:[#allocation2 + $0x40] sm:$0xff]  ;;  %v3256_v55 = vld [vmem:[%s3334_s14 + $0x38] sm:$0xff]   ;;  %v3257_v56 = vld [vmem:[%s3334_s14 + $0x10] sm:$0xff]  }
  0x23   : > { %2897 = vmatprep.subr.bf16.mxu0 %v1056_v32  ;;  %v1048_v33 = vld [vmem:[#allocation2] sm:$0xff]  ;;  %v3258_v57 = vld [vmem:[%s3334_s14 + $0x38] sm:$0xff]   ;;  %v3267_v0 = vld [vmem:[%s3334_s14 + $0x8] sm:$0xff]  }
  0x24   : > { %2898 = vmatpush3.bf16.msra.mxu0 %v1048_v33  ;;  %v3259_v58 = vld [vmem:[%s3334_s14 + $0x40] sm:$0xff]   ;;  %v3260_v59 = vld [vmem:[%s3334_s14 + $0x18] sm:$0xff]   ;;  %v3270_v1 = vld [vmem:[%s3334_s14 + $0x28] sm:$0xff]  }
  0x25   : > { %v3261_v60 = vld [vmem:[%s3334_s14 + $0x40] sm:$0xff]   ;;  %v3271_v2 = vld [vmem:[%s3334_s14 + $0x8] sm:$0xff]   ;;  %v3273_v3 = vld [vmem:[%s3334_s14 + $0x10] sm:$0xff]  }
  0x26   : > { %527 = vrot.lane.b32.xlu0 %v3230_v10, %s3293_s17  ;;  %411 = vrot.lane.b32.xlu1 %v3231_v11, %s3292_s16  ;;  %v3262_v61 = vld [vmem:[%s3334_s14] sm:$0xff]   ;;  %v3274_v4 = vld [vmem:[%s3334_s14 + $0x30] sm:$0xff]  }
  0x27   : > { %v3265_v62 = vld [vmem:[%s3334_s14 + $0x20] sm:$0xff]   ;;  %v3276_v5 = vld [vmem:[%s3334_s14 + $0x10] sm:$0xff]   ;;  %v3277_v6 = vld [vmem:[%s3334_s14 + $0x18] sm:$0xff]  }
  0x28   : > { %v3266_v63 = vld [vmem:[%s3334_s14] sm:$0xff]   ;;  %v3278_v7 = vld [vmem:[%s3334_s14 + $0x38] sm:$0xff]  }
  0x29   : > { %v3280_v8 = vld [vmem:[%s3334_s14 + $0x40] sm:$0xff]   ;;  %s3302_s14 = smov 60  }
  0x2a   : > { %298 = vrot.lane.b32.xlu0 %v3232_v12, %s3291_s15  ;;  %529 = vrot.lane.b32.xlu1 %v3233_v13, %s3293_s17  ;;  %v1052_v54 = vld [vmem:[#allocation2 + $0x20] sm:$0xff] }
  0x2e   : > { %413 = vrot.lane.b32.xlu0 %v3234_v14, %s3292_s16  ;;  %300 = vrot.lane.b32.xlu1 %v3235_v15, %s3291_s15 }
  0x32   : > { %531 = vrot.lane.b32.xlu0 %v3236_v16, %s3293_s17  ;;  %415 = vrot.lane.b32.xlu1 %v3237_v17, %s3292_s16 }
  0x36   : > { %302 = vrot.lane.b32.xlu0 %v3238_v18, %s3291_s15  ;;  %533 = vrot.lane.b32.xlu1 %v3239_v19, %s3293_s17  ;;  %v1049_v18 = vld [vmem:[#allocation2 + $0x8] sm:$0xff]  ;;  %s3303_s15 = smov 75  }
  0x3a   : > { %417 = vrot.lane.b32.xlu0 %v3240_v20, %s3292_s16  ;;  %535 = vrot.lane.b32.xlu1 %v3241_v21, %s3293_s17 }
  0x3e   : > { %419 = vrot.lane.b32.xlu0 %v3242_v22, %s3292_s16  ;;  %769 = vrot.lane.b32.xlu1 %v3243_v23, %s3294_s18  ;;  %s3304_s16 = smov 90  }
  0x42   : > { %771 = vrot.lane.b32.xlu0 %v3244_v26, %s3294_s18  ;;  %773 = vrot.lane.b32.xlu1 %v3245_v27, %s3294_s18  ;;  %v1050_v27 = vld [vmem:[#allocation2 + $0x10] sm:$0xff] }
  0x46   : > { %775 = vrot.lane.b32.xlu0 %v3246_v30, %s3294_s18  ;;  %777 = vrot.lane.b32.xlu1 %v3247_v31, %s3294_s18 }
  0x4a   : > { %779 = vrot.lane.b32.xlu0 %v3248_v35, %s3294_s18  ;;  %653 = vrot.lane.b32.xlu1 %v3249_v36, %s3295_s19 }
  0x4e   : > { %537 = vrot.lane.b32.xlu0 %v3250_v38, %s3293_s17  ;;  %881 = vrot.lane.b32.xlu1 %v3251_v39, %s3296_s20  ;;  %v1051_v38 = vld [vmem:[#allocation2 + $0x18] sm:$0xff] }
  0x52   : > { %655 = vrot.lane.b32.xlu0 %v3252_v41, %s3295_s19  ;;  %539 = vrot.lane.b32.xlu1 %v3253_v42, %s3293_s17 }
  0x56   : > { %883 = vrot.lane.b32.xlu0 %v3254_v48, %s3296_s20  ;;  %657 = vrot.lane.b32.xlu1 %v3255_v52, %s3295_s19 }
  0x5a   : > { %541 = vrot.lane.b32.xlu0 %v3256_v55, %s3293_s17  ;;  %885 = vrot.lane.b32.xlu1 %v3257_v56, %s3296_s20 }
  0x5e   : > { %659 = vrot.lane.b32.xlu0 %v3258_v57, %s3295_s19  ;;  %543 = vrot.lane.b32.xlu1 %v3259_v58, %s3293_s17  ;;  %s2896_s17 = sshll.u32 %s4162_s10, 6 }
  0x62   : > { %887 = vrot.lane.b32.xlu0 %v3260_v59, %s3296_s20  ;;  %661 = vrot.lane.b32.xlu1 %v3261_v60, %s3295_s19 }
  0x66   : > { %645 = vrot.lane.b32.xlu0 %v3262_v61, %s3295_s19  ;;  %889 = vrot.lane.b32.xlu1 %v3265_v62, %s3296_s20 }
  0x6a   : > { %763 = vrot.lane.b32.xlu0 %v3266_v63, %s3294_s18  ;;  %647 = vrot.lane.b32.xlu1 %v3267_v0, %s3295_s19  ;;  %v1053_v0 = vld [vmem:[#allocation2 + $0x28] sm:$0xff] }
  0x6e   : > { %891 = vrot.lane.b32.xlu0 %v3270_v1, %s3296_s20  ;;  %765 = vrot.lane.b32.xlu1 %v3271_v2, %s3294_s18 }
  0x72   : > { %649 = vrot.lane.b32.xlu0 %v3273_v3, %s3295_s19  ;;  %893 = vrot.lane.b32.xlu1 %v3274_v4, %s3296_s20 }
  0x76   : > { %767 = vrot.lane.b32.xlu0 %v3276_v5, %s3294_s18  ;;  %651 = vrot.lane.b32.xlu1 %v3277_v6, %s3295_s19 }
  0x7a   : > { %895 = vrot.lane.b32.xlu0 %v3278_v7, %s3296_s20  ;;  %897 = vrot.lane.b32.xlu1 %v3280_v8, %s3296_s20  ;;  %s4137_s20 = scalar_lea.vmem %s4160_s2, %s2896_s17 }
  0x84   : > { %v291_v9 = vpop.permute.xlu0 %290  ;;  %v305_v11 = vpop.permute.xlu1 %304 }
  0x85   : > { %v311_v10 = vsel %vm308_vm1, 0, %v291_v9  ;;  %v332_v12 = vsel %vm308_vm1, 0, %v305_v11 }
  0x86   : > { %337 = vst.msk [vmem:[#allocation2 + $0x48] sm:$0xff] %vm217_vm0, %v311_v10  ;;  %344 = vst.msk [vmem:[#allocation2 + $0x80] sm:$0xff] %vm217_vm0, %v332_v12  ;;  %v1054_v10 = vld [vmem:[#allocation2 + $0x30] sm:$0xff] }
  0x88   : > { %v422_v13 = vpop.permute.xlu0 %421  ;;  %v293_v15 = vpop.permute.xlu1 %292 }
  0x89   : > { %v447_v14 = vsel %vm427_vm2, 0, %v422_v13  ;;  %v314_v16 = vsel %vm308_vm1, 0, %v293_v15 }
  0x8a   : > { %461 = vst.msk [vmem:[#allocation2 + $0xc0] sm:$0xff] %vm217_vm0, %v447_v14  ;;  %338 = vst.msk [vmem:[#allocation2 + $0x50] sm:$0xff] %vm217_vm0, %v314_v16 }
  0x8c   : > { %v424_v17 = vpop.permute.xlu0 %423  ;;  %v307_v21 = vpop.permute.xlu1 %306 }
  0x8d   : > { %v450_v19 = vsel %vm427_vm2, 0, %v424_v17  ;;  %v1057_v20 = vld [vmem:[#allocation2 + $0x48] sm:$0xff]  ;;  %v335_v22 = vsel %vm308_vm1, 0, %v307_v21  ;;  %v1064_v29 = vld [vmem:[#allocation2 + $0x80] sm:$0xff] }
  0x8e   : > { %462 = vst.msk [vmem:[#allocation2 + $0xc8] sm:$0xff] %vm217_vm0, %v450_v19  ;;  %2899 = vmatprep.subr.bf16.mxu0 %v1057_v20  ;;  %345 = vst.msk [vmem:[#allocation2 + $0x88] sm:$0xff] %vm217_vm0, %v335_v22  ;;  %v1055_v20 = vld [vmem:[#allocation2 + $0x38] sm:$0xff]  ;;  %v944_v21 = vld [vmem:[%s4159_s1 + $0x40] sm:$0xff] }
  0x8f   : > { %2900 = vmatpush3.bf16.msra.mxu0 %v1049_v18  ;;  %v948_v22 = vld [vmem:[%s4159_s1 + $0x60] sm:$0xff] }
  0x90   : > { %v295_v23 = vpop.permute.xlu0 %294  ;;  %v426_v26 = vpop.permute.xlu1 %425 }
  0x91   : > { %v317_v24 = vsel %vm308_vm1, 0, %v295_v23  ;;  %v1072_v25 = vld [vmem:[#allocation2 + $0xc0] sm:$0xff]  ;;  %v453_v28 = vsel %vm427_vm2, 0, %v426_v26  ;;  %v1058_v30 = vld [vmem:[#allocation2 + $0x50] sm:$0xff] }
  0x92   : > { %339 = vst.msk [vmem:[#allocation2 + $0x58] sm:$0xff] %vm217_vm0, %v317_v24  ;;  %2997 = vmatprep.subr.bf16.mxu1 %v1072_v25  ;;  %463 = vst.msk [vmem:[#allocation2 + $0xd0] sm:$0xff] %vm217_vm0, %v453_v28  ;;  %2901 = vmatprep.subr.bf16.mxu0 %v1058_v30  ;;  %v2777_v28 = vcombine.high %v944_v21, %v948_v22 }
  0x93   : > { %2998 = vmatpush3.bf16.msra.mxu1 %v1064_v29  ;;  %2902 = vmatpush3.bf16.msra.mxu0 %v1050_v27 }
  0x94   : > { %v410_v31 = vpop.permute.xlu0 %409  ;;  %v297_v34 = vpop.permute.xlu1 %296 }
  0x95   : > { %v429_v32 = vsel %vm427_vm2, 0, %v410_v31  ;;  %v1073_v33 = vld [vmem:[#allocation2 + $0xc8] sm:$0xff]  ;;  %v320_v35 = vsel %vm308_vm1, 0, %v297_v34 }
  0x96   : > { %455 = vst.msk [vmem:[#allocation2 + $0x90] sm:$0xff] %vm217_vm0, %v429_v32  ;;  %2999 = vmatprep.subr.bf16.mxu1 %v1073_v33  ;;  %v1065_v36 = vld [vmem:[#allocation2 + $0x88] sm:$0xff]  ;;  %340 = vst.msk [vmem:[#allocation2 + $0x60] sm:$0xff] %vm217_vm0, %v320_v35 }
  0x97   : > { %3000 = vmatpush3.bf16.msra.mxu1 %v1065_v36  ;;  %v945_v36 = vld [vmem:[%s4159_s1 + $0x48] sm:$0xff] }
  0x98   : > { %v528_v37 = vpop.permute.xlu0 %527  ;;  %v412_v41 = vpop.permute.xlu1 %411 }
  0x99   : > { %v547_v39 = vsel %vm545_vm3, 0, %v528_v37  ;;  %v1059_v40 = vld [vmem:[#allocation2 + $0x58] sm:$0xff]  ;;  %v432_v42 = vsel %vm427_vm2, 0, %v412_v41  ;;  %v1074_v43 = vld [vmem:[#allocation2 + $0xd0] sm:$0xff]  ;;  %v949_v37 = vld [vmem:[%s4159_s1 + $0x68] sm:$0xff]  ;;  %v2776_v41 = vcombine.low %v944_v21, %v948_v22 }
  0x9a   : > { %573 = vst.msk [vmem:[#allocation2 + $0xd8] sm:$0xff] %vm217_vm0, %v547_v39  ;;  %2903 = vmatprep.subr.bf16.mxu0 %v1059_v40  ;;  %456 = vst.msk [vmem:[#allocation2 + $0x98] sm:$0xff] %vm217_vm0, %v432_v42  ;;  %3001 = vmatprep.subr.bf16.mxu1 %v1074_v43  ;;  %v956_v39 = vld [vmem:[%s4159_s1 + $0xa0] sm:$0xff]  ;;  %v3297_v42 = vmov 0  }
  0x9b   : > { %2904 = vmatpush3.bf16.msra.mxu0 %v1051_v38  ;;  %v952_v38 = vld [vmem:[%s4159_s1 + $0x80] sm:$0xff] }
  0x9c   : > { %v299_v44 = vpop.permute.xlu0 %298  ;;  %v530_v52 = vpop.permute.xlu1 %529 }
  0x9d   : > { %v323_v48 = vsel %vm308_vm1, 0, %v299_v44  ;;  %v1066_v50 = vld [vmem:[#allocation2 + $0x90] sm:$0xff]  ;;  %v550_v55 = vsel %vm545_vm3, 0, %v530_v52  ;;  %v1060_v56 = vld [vmem:[#allocation2 + $0x60] sm:$0xff]  ;;  %v2779_v44 = vcombine.high %v945_v36, %v949_v37 }
  0x9e   : > { %341 = vst.msk [vmem:[#allocation2 + $0x68] sm:$0xff] %vm217_vm0, %v323_v48  ;;  %3002 = vmatpush3.bf16.msra.mxu1 %v1066_v50  ;;  %574 = vst.msk [vmem:[#allocation2 + $0xe0] sm:$0xff] %vm217_vm0, %v550_v55  ;;  %2905 = vmatprep.subr.bf16.mxu0 %v1060_v56  ;;  %v2785_v50 = vcombine.high %v952_v38, %v956_v39 }
  0x9f   : > { %2906 = vmatpush3.bf16.msra.mxu0 %v1052_v54 }
  0xa0   : > { %v414_v57 = vpop.permute.xlu0 %413  ;;  %v301_v60 = vpop.permute.xlu1 %300 }
  0xa1   : > { %v435_v58 = vsel %vm427_vm2, 0, %v414_v57  ;;  %v1075_v59 = vld [vmem:[#allocation2 + $0xd8] sm:$0xff]  ;;  %v326_v61 = vsel %vm308_vm1, 0, %v301_v60  ;;  %v960_v60 = vld [vmem:[%s4159_s1 + $0xc0] sm:$0xff] }
  0xa2   : > { %457 = vst.msk [vmem:[#allocation2 + $0xa0] sm:$0xff] %vm217_vm0, %v435_v58  ;;  %3003 = vmatprep.subr.bf16.mxu1 %v1075_v59  ;;  %v1067_v62 = vld [vmem:[#allocation2 + $0x98] sm:$0xff]  ;;  %342 = vst.msk [vmem:[#allocation2 + $0x70] sm:$0xff] %vm217_vm0, %v326_v61  ;;  %v957_v59 = vld [vmem:[%s4159_s1 + $0xa8] sm:$0xff] }
  0xa3   : > { %3004 = vmatpush3.bf16.msra.mxu1 %v1067_v62  ;;  %v964_v61 = vld [vmem:[%s4159_s1 + $0xe0] sm:$0xff]  ;;  %v2784_v62 = vcombine.low %v952_v38, %v956_v39 }
  0xa4   : > { %v532_v63 = vpop.permute.xlu0 %531  ;;  %v416_v3 = vpop.permute.xlu1 %415 }
  0xa5   : > { %v553_v1 = vsel %vm545_vm3, 0, %v532_v63  ;;  %v1061_v2 = vld [vmem:[#allocation2 + $0x68] sm:$0xff]  ;;  %v438_v4 = vsel %vm427_vm2, 0, %v416_v3  ;;  %v1076_v5 = vld [vmem:[#allocation2 + $0xe0] sm:$0xff]  ;;  %v2793_v3 = vcombine.high %v960_v60, %v964_v61 }
  0xa6   : > { %575 = vst.msk [vmem:[#allocation2 + $0xe8] sm:$0xff] %vm217_vm0, %v553_v1  ;;  %2907 = vmatprep.subr.bf16.mxu0 %v1061_v2  ;;  %458 = vst.msk [vmem:[#allocation2 + $0xa8] sm:$0xff] %vm217_vm0, %v438_v4  ;;  %3005 = vmatprep.subr.bf16.mxu1 %v1076_v5  ;;  %v2787_v1 = vcombine.high %v953_v47, %v957_v59 }
  0xa7   : > { %2908 = vmatpush3.bf16.msra.mxu0 %v1053_v0 }
  0xa8   : > { %v303_v6 = vpop.permute.xlu0 %302  ;;  %v534_v9 = vpop.permute.xlu1 %533 }
  0xa9   : > { %v329_v7 = vsel %vm308_vm1, 0, %v303_v6  ;;  %v1068_v8 = vld [vmem:[#allocation2 + $0xa0] sm:$0xff]  ;;  %v556_v11 = vsel %vm545_vm3, 0, %v534_v9  ;;  %v1062_v12 = vld [vmem:[#allocation2 + $0x70] sm:$0xff]  ;;  %v961_v9 = vld [vmem:[%s4159_s1 + $0xc8] sm:$0xff]  ;;  %vm2502_vm1 = vcmask 424960  }
  0xaa   : > { %343 = vst.msk [vmem:[#allocation2 + $0x78] sm:$0xff] %vm217_vm0, %v329_v7  ;;  %3006 = vmatpush3.bf16.msra.mxu1 %v1068_v8  ;;  %576 = vst.msk [vmem:[#allocation2 + $0xf0] sm:$0xff] %vm217_vm0, %v556_v11  ;;  %2909 = vmatprep.subr.bf16.mxu0 %v1062_v12 }
  0xab   : > { %2910 = vmatpush3.bf16.msra.mxu0 %v1054_v10  ;;  %v965_v10 = vld [vmem:[%s4159_s1 + $0xe8] sm:$0xff] }
  0xac   : > { %v418_v13 = vpop.permute.xlu0 %417  ;;  %v536_v16 = vpop.permute.xlu1 %535  ;;  %v2795_v21 = vcombine.high %v961_v9, %v965_v10 }
  0xad   : > { %v441_v14 = vsel %vm427_vm2, 0, %v418_v13  ;;  %v1077_v15 = vld [vmem:[#allocation2 + $0xe8] sm:$0xff]  ;;  %v559_v17 = vsel %vm545_vm3, 0, %v536_v16  ;;  %v2786_v13 = vcombine.low %v953_v47, %v957_v59 }
  0xae   : > { %459 = vst.msk [vmem:[#allocation2 + $0xb0] sm:$0xff] %vm217_vm0, %v441_v14  ;;  %3007 = vmatprep.subr.bf16.mxu1 %v1077_v15  ;;  %v1069_v18 = vld [vmem:[#allocation2 + $0xa8] sm:$0xff]  ;;  %577 = vst.msk [vmem:[#allocation2 + $0xf8] sm:$0xff] %vm217_vm0, %v559_v17  ;;  %v968_v14 = vld [vmem:[%s4159_s1 + $0x100] sm:$0xff] }
  0xaf   : > { %3008 = vmatpush3.bf16.msra.mxu1 %v1069_v18  ;;  %v972_v15 = vld [vmem:[%s4159_s1 + $0x120] sm:$0xff]  ;;  %v2792_v18 = vcombine.low %v960_v60, %v964_v61 }
  0xb0   : > { %v420_v19 = vpop.permute.xlu0 %419  ;;  %v770_v25 = vpop.permute.xlu1 %769  ;;  %v2801_v22 = vcombine.high %v968_v14, %v972_v15 }
  0xb1   : > { %v444_v23 = vsel %vm427_vm2, 0, %v420_v19  ;;  %v1063_v24 = vld [vmem:[#allocation2 + $0x78] sm:$0xff]  ;;  %v792_v26 = vsel %vm781_vm4, 0, %v770_v25  ;;  %v1078_v27 = vld [vmem:[#allocation2 + $0xf0] sm:$0xff]  ;;  %vm2546_vm2 = vcmask 1048152  }
  0xb2   : > { %460 = vst.msk [vmem:[#allocation2 + $0xb8] sm:$0xff] %vm217_vm0, %v444_v23  ;;  %2911 = vmatprep.subr.bf16.mxu0 %v1063_v24  ;;  %812 = vst.msk [vmem:[#allocation2 + $0x180] sm:$0xff] %vm217_vm0, %v792_v26  ;;  %3009 = vmatprep.subr.bf16.mxu1 %v1078_v27 }
  0xb3   : > { %2912 = vmatpush3.bf16.msra.mxu0 %v1055_v20 }
  0xb4   : > { %v772_v29 = vpop.permute.xlu0 %771  ;;  %v774_v32 = vpop.permute.xlu1 %773 }
  0xb5   : > { %v795_v30 = vsel %vm781_vm4, 0, %v772_v29  ;;  %v1070_v31 = vld [vmem:[#allocation2 + $0xb0] sm:$0xff]  ;;  %v798_v33 = vsel %vm781_vm4, 0, %v774_v32  ;;  %v1079_v34 = vld [vmem:[#allocation2 + $0xf8] sm:$0xff]  ;;  %v976_v32 = vld [vmem:[%s4159_s1 + $0x140] sm:$0xff] }
  0xb6   : > { %813 = vst.msk [vmem:[#allocation2 + $0x188] sm:$0xff] %vm217_vm0, %v795_v30  ;;  %1733 = vmatmul.mubr.bf16.vlgmr.msra.gmra.mrb[0].mxu0 %v2768_v49  ;;  %3010 = vmatpush3.bf16.msra.mxu1 %v1070_v31  ;;  %814 = vst.msk [vmem:[#allocation2 + $0x190] sm:$0xff] %vm217_vm0, %v798_v33  ;;  %v969_v30 = vld [vmem:[%s4159_s1 + $0x108] sm:$0xff]  ;;  %v980_v33 = vld [vmem:[%s4159_s1 + $0x160] sm:$0xff] }
  0xb7   : > { %3011 = vmatprep.subr.bf16.mxu1 %v1079_v34  ;;  %1740 = vmatprep.mubr.bf16.mxu0 %v2777_v28  ;;  %v973_v31 = vld [vmem:[%s4159_s1 + $0x128] sm:$0xff]  ;;  %v2808_v60 = vcombine.low %v976_v32, %v980_v33 }
  0xb8   : > { %v776_v35 = vpop.permute.xlu0 %775  ;;  %v778_v49 = vpop.permute.xlu1 %777  ;;  %v2803_v39 = vcombine.high %v969_v30, %v973_v31 }
  0xb9   : > { %v801_v45 = vsel %vm781_vm4, 0, %v776_v35  ;;  %v1071_v46 = vld [vmem:[#allocation2 + $0xb8] sm:$0xff]  ;;  %v804_v40 = vsel %vm781_vm4, 0, %v778_v49  ;;  %v1096_v43 = vld [vmem:[#allocation2 + $0x180] sm:$0xff]  ;;  %v2794_v35 = vcombine.low %v961_v9, %v965_v10 }
  0xba   : > { %815 = vst.msk [vmem:[#allocation2 + $0x198] sm:$0xff] %vm217_vm0, %v801_v45  ;;  %3012 = vmatpush3.bf16.msra.mxu1 %v1071_v46  ;;  %816 = vst.msk [vmem:[#allocation2 + $0x1a0] sm:$0xff] %vm217_vm0, %v804_v40  ;;  %v2800_v45 = vcombine.low %v968_v14, %v972_v15  ;;  %v2809_v40 = vcombine.high %v976_v32, %v980_v33  ;;  %v992_v9 = vld [vmem:[%s4159_s1 + $0x1c0] sm:$0xff] }
  0xbb   : > { %2135 = vmatprep.subr.bf16.mxu1 %v3297_v42  ;;  %v996_v10 = vld [vmem:[%s4159_s1 + $0x1e0] sm:$0xff] }
  0xbc   : > { %v780_v48 = vpop.permute.xlu0 %779  ;;  %v654_v54 = vpop.permute.xlu1 %653 }
  0xbd   : > { %v807_v52 = vsel %vm781_vm4, 0, %v780_v48  ;;  %1878 = vmatmul.mubr.bf16.vlgmr.msra.gmra.mrb[0].mxu1 %v2770_v53  ;;  %v677_v55 = vsel %vm663_vm5, 0, %v654_v54  ;;  %v1097_v56 = vld [vmem:[#allocation2 + $0x188] sm:$0xff]  ;;  %v2778_v53 = vcombine.low %v945_v36, %v949_v37  ;;  %v1098_v0 = vld [vmem:[#allocation2 + $0x190] sm:$0xff] }
  0xbe   : > { %817 = vst.msk [vmem:[#allocation2 + $0x1a8] sm:$0xff] %vm217_vm0, %v807_v52  ;;  %1741 = vmatmul.mubr.bf16.gmra.mrb[4].mxu0 %v2776_v41  ;;  %2136 = vmatpush1.bf16.msra.mxu1 %v1096_v43  ;;  %695 = vst.msk [vmem:[#allocation2 + $0x140] sm:$0xff] %vm217_vm0, %v677_v55  ;;  %v977_v54 = vld [vmem:[%s4159_s1 + $0x148] sm:$0xff] }
  0xbf   : > { %2137 = vmatprep.subr.bf16.mxu1 %v3297_v42  ;;  %1885 = vmatprep.mubr.bf16.mxu1 %v2779_v44  ;;  %v981_v55 = vld [vmem:[%s4159_s1 + $0x168] sm:$0xff] }
  0xc0   : > { %v538_v57 = vpop.permute.xlu0 %537  ;;  %1748 = vmatprep.mubr.bf16.mxu0 %v2785_v50  ;;  %v882_v58 = vpop.permute.xlu1 %881  ;;  %v2811_v61 = vcombine.high %v977_v54, %v981_v55 }
  0xc1   : > { %v562_v51 = vsel %vm545_vm3, 0, %v538_v57  ;;  %v901_v63 = vsel %vm899_vm6, 0, %v882_v58  ;;  %v1099_v8 = vld [vmem:[#allocation2 + $0x198] sm:$0xff]  ;;  %v1100_v20 = vld [vmem:[#allocation2 + $0x1a0] sm:$0xff] }
  0xc2   : > { %578 = vst.msk [vmem:[#allocation2 + $0x100] sm:$0xff] %vm217_vm0, %v562_v51  ;;  %2138 = vmatpush1.bf16.msra.mxu1 %v1097_v56  ;;  %927 = vst.msk [vmem:[#allocation2 + $0x1b0] sm:$0xff] %vm217_vm0, %v901_v63  ;;  %v984_v56 = vld [vmem:[%s4159_s1 + $0x180] sm:$0xff]  ;;  %v2802_v51 = vcombine.low %v969_v30, %v973_v31 }
  0xc3   : > { %2139 = vmatprep.subr.bf16.mxu1 %v3297_v42  ;;  %v988_v57 = vld [vmem:[%s4159_s1 + $0x1a0] sm:$0xff] }
  0xc4   : > { %v656_v2 = vpop.permute.xlu0 %655  ;;  %v540_v5 = vpop.permute.xlu1 %539  ;;  %v1000_v30 = vld [vmem:[%s4159_s1 + $0x200] sm:$0xff] }
  0xc5   : > { %1886 = vmatmul.mubr.bf16.gmra.mrb[4].mxu1 %v2778_v53  ;;  %v680_v4 = vsel %vm663_vm5, 0, %v656_v2  ;;  %v1088_v6 = vld [vmem:[#allocation2 + $0x140] sm:$0xff]  ;;  %v565_v7 = vsel %vm545_vm3, 0, %v540_v5  ;;  %v1101_v29 = vld [vmem:[#allocation2 + $0x1a8] sm:$0xff] }
  0xc6   : > { %1749 = vmatmul.mubr.bf16.gmra.mrb[8].mxu0 %v2784_v62  ;;  %2140 = vmatpush1.bf16.msra.mxu1 %v1098_v0  ;;  %696 = vst.msk [vmem:[#allocation2 + $0x148] sm:$0xff] %vm217_vm0, %v680_v4  ;;  %579 = vst.msk [vmem:[#allocation2 + $0x108] sm:$0xff] %vm217_vm0, %v565_v7  ;;  %v2817_v0 = vcombine.high %v984_v56, %v988_v57  ;;  %v985_v7 = vld [vmem:[%s4159_s1 + $0x188] sm:$0xff]  ;;  %v1004_v31 = vld [vmem:[%s4159_s1 + $0x220] sm:$0xff] }
  0xc7   : > { %3097 = vmatprep.subr.bf16.mxu0 %v1088_v6  ;;  %2141 = vmatprep.subr.bf16.mxu1 %v3297_v42 }
  0xc8   : > { %1893 = vmatprep.mubr.bf16.mxu1 %v2787_v1  ;;  %1756 = vmatprep.mubr.bf16.mxu0 %v2793_v3  ;;  %v884_v11 = vpop.permute.xlu0 %883  ;;  %v658_v17 = vpop.permute.xlu1 %657 }
  0xc9   : > { %v1080_v12 = vld [vmem:[#allocation2 + $0x100] sm:$0xff]  ;;  %v904_v16 = vsel %vm899_vm6, 0, %v884_v11  ;;  %v683_v19 = vsel %vm663_vm5, 0, %v658_v17  ;;  %v1102_v38 = vld [vmem:[#allocation2 + $0x1b0] sm:$0xff]  ;;  %v2816_v17 = vcombine.low %v984_v56, %v988_v57 }
  0xca   : > { %3098 = vmatpush3.bf16.msra.mxu0 %v1080_v12  ;;  %2142 = vmatpush1.bf16.msra.mxu1 %v1099_v8  ;;  %928 = vst.msk [vmem:[#allocation2 + $0x1b8] sm:$0xff] %vm217_vm0, %v904_v16  ;;  %697 = vst.msk [vmem:[#allocation2 + $0x150] sm:$0xff] %vm217_vm0, %v683_v19  ;;  %v989_v8 = vld [vmem:[%s4159_s1 + $0x1a8] sm:$0xff] }
  0xcb   : > { %2143 = vmatprep.subr.bf16.mxu1 %v3297_v42  ;;  %v2818_v33 = vcombine.low %v985_v7, %v989_v8 }
  0xcc   : > { %v542_v23 = vpop.permute.xlu0 %541  ;;  %v886_v26 = vpop.permute.xlu1 %885 }
  0xcd   : > { %1894 = vmatmul.mubr.bf16.gmra.mrb[8].mxu1 %v2786_v13  ;;  %v1089_v24 = vld [vmem:[#allocation2 + $0x148] sm:$0xff]  ;;  %v568_v25 = vsel %vm545_vm3, 0, %v542_v23  ;;  %v907_v28 = vsel %vm899_vm6, 0, %v886_v26  ;;  %v2810_v13 = vcombine.low %v977_v54, %v981_v55  ;;  %v1008_v54 = vld [vmem:[%s4159_s1 + $0x240] sm:$0xff] }
  0xce   : > { %1757 = vmatmul.mubr.bf16.gmra.mrb[12].mxu0 %v2792_v18  ;;  %2144 = vmatpush1.bf16.msra.mxu1 %v1100_v20  ;;  %v1081_v27 = vld [vmem:[#allocation2 + $0x108] sm:$0xff]  ;;  %580 = vst.msk [vmem:[#allocation2 + $0x110] sm:$0xff] %vm217_vm0, %v568_v25  ;;  %929 = vst.msk [vmem:[#allocation2 + $0x1c0] sm:$0xff] %vm217_vm0, %v907_v28  ;;  %v2819_v18 = vcombine.high %v985_v7, %v989_v8  ;;  %v2825_v20 = vcombine.high %v992_v9, %v996_v10  ;;  %v1012_v55 = vld [vmem:[%s4159_s1 + $0x260] sm:$0xff] }
  0xcf   : > { %2145 = vmatprep.subr.bf16.mxu1 %v3297_v42  ;;  %1901 = vmatprep.mubr.bf16.mxu1 %v2795_v21  ;;  %v993_v28 = vld [vmem:[%s4159_s1 + $0x1c8] sm:$0xff]  ;;  %v1028_v7 = vld [vmem:[%s4159_s1 + $0x2e0] sm:$0xff] }
  0xd0   : > { %1764 = vmatprep.mubr.bf16.mxu0 %v2801_v22  ;;  %3099 = vmatprep.subr.bf16.mxu0 %v1089_v24  ;;  %v660_v34 = vpop.permute.xlu0 %659  ;;  %v544_v37 = vpop.permute.xlu1 %543 }
  0xd1   : > { %3100 = vmatpush3.bf16.msra.mxu0 %v1081_v27  ;;  %v686_v36 = vsel %vm663_vm5, 0, %v660_v34  ;;  %v1090_v46 = vld [vmem:[#allocation2 + $0x150] sm:$0xff]  ;;  %v571_v49 = vsel %vm545_vm3, 0, %v544_v37  ;;  %v1103_v52 = vld [vmem:[#allocation2 + $0x1b8] sm:$0xff]  ;;  %v2824_v37 = vcombine.low %v992_v9, %v996_v10  ;;  %vm2548_vm3 = vcmask 547840  }
  0xd2   : > { %2146 = vmatpush1.bf16.msra.mxu1 %v1101_v29  ;;  %698 = vst.msk [vmem:[#allocation2 + $0x158] sm:$0xff] %vm217_vm0, %v686_v36  ;;  %3101 = vmatprep.subr.bf16.mxu0 %v1090_v46  ;;  %581 = vst.msk [vmem:[#allocation2 + $0x118] sm:$0xff] %vm217_vm0, %v571_v49  ;;  %v997_v29 = vld [vmem:[%s4159_s1 + $0x1e8] sm:$0xff] }
  0xd3   : > { %2147 = vmatprep.subr.bf16.mxu1 %v3297_v42  ;;  %v2826_v56 = vcombine.low %v993_v28, %v997_v29 }
  0xd4   : > { %v888_v41 = vpop.permute.xlu0 %887  ;;  %v662_v48 = vpop.permute.xlu1 %661 }
  0xd5   : > { %1902 = vmatmul.mubr.bf16.gmra.mrb[12].mxu1 %v2794_v35  ;;  %v1082_v43 = vld [vmem:[#allocation2 + $0x110] sm:$0xff]  ;;  %v910_v44 = vsel %vm899_vm6, 0, %v888_v41  ;;  %v689_v50 = vsel %vm663_vm5, 0, %v662_v48  ;;  %v1104_v1 = vld [vmem:[#allocation2 + $0x1c0] sm:$0xff] }
  0xd6   : > { %1765 = vmatmul.mubr.bf16.gmra.mrb[16].mxu0 %v2800_v45  ;;  %2148 = vmatpush1.bf16.msra.mxu1 %v1102_v38  ;;  %930 = vst.msk [vmem:[#allocation2 + $0x1c8] sm:$0xff] %vm217_vm0, %v910_v44  ;;  %699 = vst.msk [vmem:[#allocation2 + $0x160] sm:$0xff] %vm217_vm0, %v689_v50  ;;  %v2827_v45 = vcombine.high %v993_v28, %v997_v29  ;;  %v2833_v38 = vcombine.high %v1000_v30, %v1004_v31  ;;  %v1001_v50 = vld [vmem:[%s4159_s1 + $0x208] sm:$0xff] }
  0xd7   : > { %1909 = vmatprep.mubr.bf16.mxu1 %v2803_v39  ;;  %1772 = vmatprep.mubr.bf16.mxu0 %v2809_v40  ;;  %v1041_v28 = vld [vmem:[%s4159_s1 + $0x348] sm:$0xff] }
  0xd8   : > { %2149 = vmatprep.subr.bf16.mxu1 %v3297_v42  ;;  %3102 = vmatpush3.bf16.msra.mxu0 %v1082_v43  ;;  %v646_v47 = vpop.permute.xlu0 %645  ;;  %v890_v59 = vpop.permute.xlu1 %889  ;;  %v1045_v29 = vld [vmem:[%s4159_s1 + $0x368] sm:$0xff] }
  0xd9   : > { %v1091_v53 = vld [vmem:[#allocation2 + $0x158] sm:$0xff]  ;;  %v665_v58 = vsel %vm663_vm5, 0, %v646_v47  ;;  %v913_v63 = vsel %vm899_vm6, 0, %v890_v59  ;;  %v2832_v47 = vcombine.low %v1000_v30, %v1004_v31  ;;  %v938_v30 = vld [vmem:[%s4159_s1 + $0x10] sm:$0xff] }
  0xda   : > { %2150 = vmatpush1.bf16.msra.mxu1 %v1103_v52  ;;  %3103 = vmatprep.subr.bf16.mxu0 %v1091_v53  ;;  %v1083_v62 = vld [vmem:[#allocation2 + $0x118] sm:$0xff]  ;;  %691 = vst.msk [vmem:[#allocation2 + $0x120] sm:$0xff] %vm217_vm0, %v665_v58  ;;  %931 = vst.msk [vmem:[#allocation2 + $0x1d0] sm:$0xff] %vm217_vm0, %v913_v63  ;;  %v1005_v52 = vld [vmem:[%s4159_s1 + $0x228] sm:$0xff]  ;;  %v2841_v58 = vcombine.high %v1008_v54, %v1012_v55 }
  0xdb   : > { %2151 = vmatprep.subr.bf16.mxu1 %v3297_v42  ;;  %v1020_v63 = vld [vmem:[%s4159_s1 + $0x2a0] sm:$0xff]  ;;  %v942_v31 = vld [vmem:[%s4159_s1 + $0x30] sm:$0xff] }
  0xdc   : > { %3104 = vmatpush3.bf16.msra.mxu0 %v1083_v62  ;;  %v764_v2 = vpop.permute.xlu0 %763  ;;  %v648_v4 = vpop.permute.xlu1 %647  ;;  %v1016_v62 = vld [vmem:[%s4159_s1 + $0x280] sm:$0xff] }
  0xdd   : > { %1910 = vmatmul.mubr.bf16.gmra.mrb[16].mxu1 %v2802_v51  ;;  %v783_v3 = vsel %vm781_vm4, 0, %v764_v2  ;;  %v1092_v5 = vld [vmem:[#allocation2 + $0x160] sm:$0xff]  ;;  %v668_v6 = vsel %vm663_vm5, 0, %v648_v4  ;;  %v1105_v11 = vld [vmem:[#allocation2 + $0x1c8] sm:$0xff]  ;;  %v2835_v51 = vcombine.high %v1001_v50, %v1005_v52  ;;  %v2840_v2 = vcombine.low %v1008_v54, %v1012_v55 }
  0xde   : > { %1773 = vmatmul.mubr.bf16.gmra.mrb[20].mxu0 %v2808_v60  ;;  %1917 = vmatprep.mubr.bf16.mxu1 %v2811_v61  ;;  %809 = vst.msk [vmem:[#allocation2 + $0x168] sm:$0xff] %vm217_vm0, %v783_v3  ;;  %692 = vst.msk [vmem:[#allocation2 + $0x128] sm:$0xff] %vm217_vm0, %v668_v6  ;;  %v1009_v60 = vld [vmem:[%s4159_s1 + $0x248] sm:$0xff]  ;;  %v2849_v4 = vcombine.high %v1016_v62, %v1020_v63  ;;  %v2848_v9 = vcombine.low %v1016_v62, %v1020_v63  ;;  %v967_v62 = vld [vmem:[%s4159_s1 + $0xf8] sm:$0xff] }
  0xdf   : > { %1780 = vmatprep.mubr.bf16.mxu0 %v2817_v0  ;;  %2152 = vmatpush1.bf16.msra.mxu1 %v1104_v1  ;;  %v1013_v61 = vld [vmem:[%s4159_s1 + $0x268] sm:$0xff]  ;;  %v2834_v1 = vcombine.low %v1001_v50, %v1005_v52  ;;  %v970_v63 = vld [vmem:[%s4159_s1 + $0x110] sm:$0xff] }
  0xe0   : > { %2153 = vmatprep.subr.bf16.mxu1 %v3297_v42  ;;  %3105 = vmatprep.subr.bf16.mxu0 %v1092_v5  ;;  %v892_v12 = vpop.permute.xlu0 %891  ;;  %v766_v16 = vpop.permute.xlu1 %765  ;;  %v2843_v3 = vcombine.high %v1009_v60, %v1013_v61  ;;  %v1017_v5 = vld [vmem:[%s4159_s1 + $0x288] sm:$0xff]  ;;  %v2842_v8 = vcombine.low %v1009_v60, %v1013_v61  ;;  %v963_v61 = vld [vmem:[%s4159_s1 + $0xd8] sm:$0xff] }
  0xe1   : > { %v1084_v14 = vld [vmem:[#allocation2 + $0x120] sm:$0xff]  ;;  %v916_v15 = vsel %vm899_vm6, 0, %v892_v12  ;;  %v786_v19 = vsel %vm781_vm4, 0, %v766_v16  ;;  %v1106_v21 = vld [vmem:[#allocation2 + $0x1d0] sm:$0xff]  ;;  %v1021_v6 = vld [vmem:[%s4159_s1 + $0x2a8] sm:$0xff] }
  0xe2   : > { %3106 = vmatpush3.bf16.msra.mxu0 %v1084_v14  ;;  %932 = vst.msk [vmem:[#allocation2 + $0x1d8] sm:$0xff] %vm217_vm0, %v916_v15  ;;  %810 = vst.msk [vmem:[#allocation2 + $0x170] sm:$0xff] %vm217_vm0, %v786_v19  ;;  %v2851_v10 = vcombine.high %v1017_v5, %v1021_v6  ;;  %v1025_v12 = vld [vmem:[%s4159_s1 + $0x2c8] sm:$0xff]  ;;  %v1032_v14 = vld [vmem:[%s4159_s1 + $0x300] sm:$0xff]  ;;  %v2850_v16 = vcombine.low %v1017_v5, %v1021_v6 }
  0xe3   : > { %2154 = vmatpush1.bf16.msra.mxu1 %v1105_v11  ;;  %v1036_v15 = vld [vmem:[%s4159_s1 + $0x320] sm:$0xff]  ;;  %v971_v5 = vld [vmem:[%s4159_s1 + $0x118] sm:$0xff] }
  0xe4   : > { %2155 = vmatprep.subr.bf16.mxu1 %v3297_v42  ;;  %v650_v22 = vpop.permute.xlu0 %649  ;;  %v894_v25 = vpop.permute.xlu1 %893  ;;  %v2865_v19 = vcombine.high %v1032_v14, %v1036_v15  ;;  %v975_v6 = vld [vmem:[%s4159_s1 + $0x138] sm:$0xff] }
  0xe5   : > { %1918 = vmatmul.mubr.bf16.gmra.mrb[20].mxu1 %v2810_v13  ;;  %v1093_v23 = vld [vmem:[#allocation2 + $0x168] sm:$0xff]  ;;  %v671_v24 = vsel %vm663_vm5, 0, %v650_v22  ;;  %v919_v27 = vsel %vm899_vm6, 0, %v894_v25  ;;  %v1040_v22 = vld [vmem:[%s4159_s1 + $0x340] sm:$0xff]  ;;  %v2864_v25 = vcombine.low %v1032_v14, %v1036_v15  ;;  %v986_v14 = vld [vmem:[%s4159_s1 + $0x190] sm:$0xff] }
  0xe6   : > { %1781 = vmatmul.mubr.bf16.gmra.mrb[24].mxu0 %v2816_v17  ;;  %1925 = vmatprep.mubr.bf16.mxu1 %v2819_v18  ;;  %v1085_v26 = vld [vmem:[#allocation2 + $0x128] sm:$0xff]  ;;  %693 = vst.msk [vmem:[#allocation2 + $0x130] sm:$0xff] %vm217_vm0, %v671_v24  ;;  %933 = vst.msk [vmem:[#allocation2 + $0x1e0] sm:$0xff] %vm217_vm0, %v919_v27  ;;  %v990_v15 = vld [vmem:[%s4159_s1 + $0x1b0] sm:$0xff] }
  0xe7   : > { %1788 = vmatprep.mubr.bf16.mxu0 %v2825_v20  ;;  %2156 = vmatpush1.bf16.msra.mxu1 %v1106_v21  ;;  %v1029_v13 = vld [vmem:[%s4159_s1 + $0x2e8] sm:$0xff] }
  0xe8   : > { %3107 = vmatprep.subr.bf16.mxu0 %v1093_v23  ;;  %v768_v32 = vpop.permute.xlu0 %767  ;;  %2157 = vmatprep.subr.bf16.mxu1 %v3297_v42  ;;  %v652_v35 = vpop.permute.xlu1 %651  ;;  %v2859_v18 = vcombine.high %v1025_v12, %v1029_v13  ;;  %v1033_v20 = vld [vmem:[%s4159_s1 + $0x308] sm:$0xff]  ;;  %v1044_v23 = vld [vmem:[%s4159_s1 + $0x360] sm:$0xff]  ;;  %v2858_v24 = vcombine.low %v1025_v12, %v1029_v13  ;;  %v979_v12 = vld [vmem:[%s4159_s1 + $0x158] sm:$0xff] }
  0xe9   : > { %3108 = vmatpush3.bf16.msra.mxu0 %v1085_v26  ;;  %v789_v34 = vsel %vm781_vm4, 0, %v768_v32  ;;  %v1107_v36 = vld [vmem:[#allocation2 + $0x1d8] sm:$0xff]  ;;  %v674_v46 = vsel %vm663_vm5, 0, %v652_v35  ;;  %v1094_v49 = vld [vmem:[#allocation2 + $0x170] sm:$0xff]  ;;  %v1037_v21 = vld [vmem:[%s4159_s1 + $0x328] sm:$0xff]  ;;  %v2873_v27 = vcombine.high %v1040_v22, %v1044_v23  ;;  %v2773_v35 = vcombine.high %v938_v30, %v942_v31 }
  0xea   : > { %811 = vst.msk [vmem:[#allocation2 + $0x178] sm:$0xff] %vm217_vm0, %v789_v34  ;;  %694 = vst.msk [vmem:[#allocation2 + $0x138] sm:$0xff] %vm217_vm0, %v674_v46  ;;  %3109 = vmatprep.subr.bf16.mxu0 %v1094_v49  ;;  %v2867_v26 = vcombine.high %v1033_v20, %v1037_v21  ;;  %v2866_v32 = vcombine.low %v1033_v20, %v1037_v21  ;;  %v2875_v34 = vcombine.high %v1041_v28, %v1045_v29  ;;  %v950_v46 = vld [vmem:[%s4159_s1 + $0x70] sm:$0xff]  ;;  %v983_v13 = vld [vmem:[%s4159_s1 + $0x178] sm:$0xff]  ;;  %vm2592_vm4 = vcmask 1048272  }
  0xeb   : > { %2158 = vmatpush1.bf16.msra.mxu1 %v1107_v36  ;;  %v939_v36 = vld [vmem:[%s4159_s1 + $0x18] sm:$0xff]  ;;  %v2874_v49 = vcombine.low %v1041_v28, %v1045_v29  ;;  %vm2594_vm5 = vcmask 670720  }
  0xec   : > { %v896_v39 = vpop.permute.xlu0 %895  ;;  %2159 = vmatprep.subr.bf16.mxu1 %v3297_v42  ;;  %v898_v43 = vpop.permute.xlu1 %897  ;;  %v987_v20 = vld [vmem:[%s4159_s1 + $0x198] sm:$0xff] }
  0xed   : > { %1926 = vmatmul.mubr.bf16.gmra.mrb[24].mxu1 %v2818_v33  ;;  %v922_v40 = vsel %vm899_vm6, 0, %v896_v39  ;;  %v1086_v41 = vld [vmem:[#allocation2 + $0x130] sm:$0xff]  ;;  %v925_v44 = vsel %vm899_vm6, 0, %v898_v43  ;;  %v1108_v48 = vld [vmem:[#allocation2 + $0x1e0] sm:$0xff]  ;;  %v2872_v33 = vcombine.low %v1040_v22, %v1044_v23  ;;  %v951_v43 = vld [vmem:[%s4159_s1 + $0x78] sm:$0xff] }
  0xee   : > { %1789 = vmatmul.mubr.bf16.gmra.mrb[28].mxu0 %v2824_v37  ;;  %1933 = vmatprep.mubr.bf16.mxu1 %v2827_v45  ;;  %934 = vst.msk [vmem:[#allocation2 + $0x1e8] sm:$0xff] %vm217_vm0, %v922_v40  ;;  %935 = vst.msk [vmem:[#allocation2 + $0x1f0] sm:$0xff] %vm217_vm0, %v925_v44  ;;  %v943_v37 = vld [vmem:[%s4159_s1 + $0x38] sm:$0xff]  ;;  %v946_v45 = vld [vmem:[%s4159_s1 + $0x50] sm:$0xff] }
  0xef   : > { %1796 = vmatprep.mubr.bf16.mxu0 %v2833_v38  ;;  %3110 = vmatpush3.bf16.msra.mxu0 %v1086_v41  ;;  %v2772_v38 = vcombine.low %v938_v30, %v942_v31  ;;  %v2775_v39 = vcombine.high %v939_v36, %v943_v37  ;;  %v2781_v40 = vcombine.high %v946_v45, %v950_v46  ;;  %v947_v41 = vld [vmem:[%s4159_s1 + $0x58] sm:$0xff]  ;;  %v954_v44 = vld [vmem:[%s4159_s1 + $0x90] sm:$0xff] }
  0xf0   : > { %2160 = vmatpush1.bf16.msra.mxu1 %v1108_v48  ;;  %v958_v48 = vld [vmem:[%s4159_s1 + $0xb0] sm:$0xff]  ;;  %v2774_v50 = vcombine.low %v939_v36, %v943_v37  ;;  %v2780_v52 = vcombine.low %v946_v45, %v950_v46  ;;  %v2783_v54 = vcombine.high %v947_v41, %v951_v43  ;;  %v991_v21 = vld [vmem:[%s4159_s1 + $0x1b8] sm:$0xff] }
  0xf1   : > { %v1095_v57 = vld [vmem:[#allocation2 + $0x178] sm:$0xff]  ;;  %2161 = vmatprep.subr.bf16.mxu1 %v3297_v42  ;;  %v2789_v55 = vcombine.high %v954_v44, %v958_v48  ;;  %v994_v22 = vld [vmem:[%s4159_s1 + $0x1d0] sm:$0xff] }
  0xf2   : > { %3111 = vmatprep.subr.bf16.mxu0 %v1095_v57  ;;  %v1087_v53 = vld [vmem:[#allocation2 + $0x138] sm:$0xff]  ;;  %v998_v23 = vld [vmem:[%s4159_s1 + $0x1f0] sm:$0xff] }
  0xf3   : > { %3112 = vmatpush3.bf16.msra.mxu0 %v1087_v53  ;;  %v959_v57 = vld [vmem:[%s4159_s1 + $0xb8] sm:$0xff]  ;;  %v2782_v53 = vcombine.low %v947_v41, %v951_v43  ;;  %v1002_v30 = vld [vmem:[%s4159_s1 + $0x210] sm:$0xff] }
  0xf4   : > { %v995_v28 = vld [vmem:[%s4159_s1 + $0x1d8] sm:$0xff]  ;;  %v1006_v31 = vld [vmem:[%s4159_s1 + $0x230] sm:$0xff] }
  0xf5   : > { %1934 = vmatmul.mubr.bf16.gmra.mrb[28].mxu1 %v2826_v56  ;;  %v1109_v59 = vld [vmem:[#allocation2 + $0x1e8] sm:$0xff]  ;;  %v1110_v0 = vld [vmem:[#allocation2 + $0x1f0] sm:$0xff]  ;;  %v955_v56 = vld [vmem:[%s4159_s1 + $0x98] sm:$0xff] }
  0xf6   : > { %1797 = vmatmul.mubr.bf16.gmra.mrb[32].mxu0 %v2832_v47  ;;  %1941 = vmatprep.mubr.bf16.mxu1 %v2835_v51  ;;  %v962_v47 = vld [vmem:[%s4159_s1 + $0xd0] sm:$0xff]  ;;  %v999_v29 = vld [vmem:[%s4159_s1 + $0x1f8] sm:$0xff] }
  0xf7   : > { %1804 = vmatprep.mubr.bf16.mxu0 %v2841_v58  ;;  %2162 = vmatpush1.bf16.msra.mxu1 %v1109_v59  ;;  %v966_v51 = vld [vmem:[%s4159_s1 + $0xf0] sm:$0xff]  ;;  %v2788_v58 = vcombine.low %v954_v44, %v958_v48  ;;  %v2791_v59 = vcombine.high %v955_v56, %v959_v57  ;;  %v1003_v36 = vld [vmem:[%s4159_s1 + $0x218] sm:$0xff] }
  0xf8   : > { %2163 = vmatprep.subr.bf16.mxu1 %v3297_v42  ;;  %v1024_v42 = vld [vmem:[%s4159_s1 + $0x2c0] sm:$0xff]  ;;  %v2797_v60 = vcombine.high %v962_v47, %v966_v51  ;;  %v1007_v37 = vld [vmem:[%s4159_s1 + $0x238] sm:$0xff]  ;;  %v1010_v45 = vld [vmem:[%s4159_s1 + $0x250] sm:$0xff] }
  0xf9   : > { %v2857_v11 = vcombine.high %v1024_v42, %v1028_v7  ;;  %v2856_v17 = vcombine.low %v1024_v42, %v1028_v7  ;;  %v978_v42 = vld [vmem:[%s4159_s1 + $0x150] sm:$0xff]  ;;  %v1011_v41 = vld [vmem:[%s4159_s1 + $0x258] sm:$0xff] }
  0xfa   : > { %v982_v7 = vld [vmem:[%s4159_s1 + $0x170] sm:$0xff]  ;;  %v1015_v43 = vld [vmem:[%s4159_s1 + $0x278] sm:$0xff] }
  0xfb   : > { %2164 = vmatpush1.bf16.msra.mxu1 %v1110_v0  ;;  %v974_v0 = vld [vmem:[%s4159_s1 + $0x130] sm:$0xff] }
  0xfc   : > { %v1014_v46 = vld [vmem:[%s4159_s1 + $0x270] sm:$0xff] }
  0xfd   : > { %1942 = vmatmul.mubr.bf16.gmra.mrb[32].mxu1 %v2834_v1  ;;  %v2790_v1 = vcombine.low %v955_v56, %v959_v57  ;;  %v1018_v44 = vld [vmem:[%s4159_s1 + $0x290] sm:$0xff]  ;;  %v1019_v56 = vld [vmem:[%s4159_s1 + $0x298] sm:$0xff] }
  0xfe   : > { %1805 = vmatmul.mubr.bf16.gmra.mrb[36].mxu0 %v2840_v2  ;;  %1949 = vmatprep.mubr.bf16.mxu1 %v2843_v3  ;;  %v2796_v2 = vcombine.low %v962_v47, %v966_v51  ;;  %v2799_v3 = vcombine.high %v963_v61, %v967_v62  ;;  %v1022_v48 = vld [vmem:[%s4159_s1 + $0x2b0] sm:$0xff]  ;;  %v1023_v57 = vld [vmem:[%s4159_s1 + $0x2b8] sm:$0xff] }
  0xff   : > { %1812 = vmatprep.mubr.bf16.mxu0 %v2849_v4  ;;  %v2805_v4 = vcombine.high %v970_v63, %v974_v0  ;;  %v1026_v47 = vld [vmem:[%s4159_s1 + $0x2d0] sm:$0xff] }
 0x100   : > { %v1030_v51 = vld [vmem:[%s4159_s1 + $0x2f0] sm:$0xff] }
 0x105   : > { %1950 = vmatmul.mubr.bf16.gmra.mrb[36].mxu1 %v2842_v8  ;;  %v2798_v8 = vcombine.low %v963_v61, %v967_v62  ;;  %v1027_v61 = vld [vmem:[%s4159_s1 + $0x2d8] sm:$0xff] }
 0x106   : > { %1813 = vmatmul.mubr.bf16.gmra.mrb[40].mxu0 %v2848_v9  ;;  %1957 = vmatprep.mubr.bf16.mxu1 %v2851_v10  ;;  %v2804_v9 = vcombine.low %v970_v63, %v974_v0  ;;  %v2807_v10 = vcombine.high %v971_v5, %v975_v6  ;;  %v1031_v62 = vld [vmem:[%s4159_s1 + $0x2f8] sm:$0xff]  ;;  %v1034_v63 = vld [vmem:[%s4159_s1 + $0x310] sm:$0xff] }
 0x107   : > { %1820 = vmatprep.mubr.bf16.mxu0 %v2857_v11  ;;  %v2813_v11 = vcombine.high %v978_v42, %v982_v7  ;;  %v1038_v0 = vld [vmem:[%s4159_s1 + $0x330] sm:$0xff] }
 0x10d   : > { %1958 = vmatmul.mubr.bf16.gmra.mrb[40].mxu1 %v2850_v16  ;;  %v2806_v16 = vcombine.low %v971_v5, %v975_v6  ;;  %v1035_v5 = vld [vmem:[%s4159_s1 + $0x318] sm:$0xff] }
 0x10e   : > { %1821 = vmatmul.mubr.bf16.gmra.mrb[44].mxu0 %v2856_v17  ;;  %1965 = vmatprep.mubr.bf16.mxu1 %v2859_v18  ;;  %v2812_v17 = vcombine.low %v978_v42, %v982_v7  ;;  %v2815_v18 = vcombine.high %v979_v12, %v983_v13  ;;  %v1039_v6 = vld [vmem:[%s4159_s1 + $0x338] sm:$0xff]  ;;  %v1042_v42 = vld [vmem:[%s4159_s1 + $0x350] sm:$0xff] }
 0x10f   : > { %1828 = vmatprep.mubr.bf16.mxu0 %v2865_v19  ;;  %v2821_v19 = vcombine.high %v986_v14, %v990_v15  ;;  %v1046_v7 = vld [vmem:[%s4159_s1 + $0x370] sm:$0xff] }
 0x115   : > { %1966 = vmatmul.mubr.bf16.gmra.mrb[44].mxu1 %v2858_v24  ;;  %v2814_v24 = vcombine.low %v979_v12, %v983_v13  ;;  %v1043_v12 = vld [vmem:[%s4159_s1 + $0x358] sm:$0xff] }
 0x116   : > { %1829 = vmatmul.mubr.bf16.gmra.mrb[48].mxu0 %v2864_v25  ;;  %1973 = vmatprep.mubr.bf16.mxu1 %v2867_v26  ;;  %v2820_v25 = vcombine.low %v986_v14, %v990_v15  ;;  %v2823_v26 = vcombine.high %v987_v20, %v991_v21  ;;  %v1047_v13 = vld [vmem:[%s4159_s1 + $0x378] sm:$0xff]  ;;  %v2870_v14 = vcombine.low %v1035_v5, %v1039_v6 }
 0x117   : > { %1836 = vmatprep.mubr.bf16.mxu0 %v2873_v27  ;;  %v2829_v27 = vcombine.high %v994_v22, %v998_v23 }
 0x11d   : > { %1974 = vmatmul.mubr.bf16.gmra.mrb[48].mxu1 %v2866_v32  ;;  %v2822_v32 = vcombine.low %v987_v20, %v991_v21 }
 0x11e   : > { %1837 = vmatmul.mubr.bf16.gmra.mrb[52].mxu0 %v2872_v33  ;;  %1981 = vmatprep.mubr.bf16.mxu1 %v2875_v34  ;;  %v2828_v33 = vcombine.low %v994_v22, %v998_v23  ;;  %v2831_v34 = vcombine.high %v995_v28, %v999_v29 }
 0x11f   : > { %2022 = vmatprep.mubr.bf16.mxu0 %v2773_v35  ;;  %v2837_v35 = vcombine.high %v1002_v30, %v1006_v31 }
 0x125   : > { %1982 = vmatmul.mubr.bf16.gmra.mrb[52].mxu1 %v2874_v49  ;;  %v2830_v49 = vcombine.low %v995_v28, %v999_v29 }
 0x126   : > { %2023 = vmatmul.mubr.bf16.vlgmr.msra.gmra.mrb[56].mxu0 %v2772_v38  ;;  %2880 = vmatprep.mubr.msk.bf16.mxu1 %vm1657_vm7, %v2775_v39  ;;  %v2836_v38 = vcombine.low %v1002_v30, %v1006_v31  ;;  %v2839_v39 = vcombine.high %v1003_v36, %v1007_v37 }
 0x127   : > { %2030 = vmatprep.mubr.bf16.mxu0 %v2781_v40  ;;  %v2845_v40 = vcombine.high %v1010_v45, %v1014_v46 }
 0x12d   : > { %2168 = vmatmul.mubr.bf16.vlgmr.msra.gmra.mrb[56].mxu1 %v2774_v50  ;;  %v2838_v50 = vcombine.low %v1003_v36, %v1007_v37 }
 0x12e   : > { %2031 = vmatmul.mubr.bf16.gmra.mrb[60].mxu0 %v2780_v52  ;;  %2881 = vmatprep.mubr.msk.bf16.mxu1 %vm1657_vm7, %v2783_v54  ;;  %v2844_v52 = vcombine.low %v1010_v45, %v1014_v46  ;;  %v2847_v54 = vcombine.high %v1011_v41, %v1015_v43 }
 0x12f   : > { %2038 = vmatprep.mubr.bf16.mxu0 %v2789_v55  ;;  %v2853_v55 = vcombine.high %v1018_v44, %v1022_v48 }
 0x135   : > { %2176 = vmatmul.mubr.bf16.gmra.mrb[60].mxu1 %v2782_v53  ;;  %v2846_v53 = vcombine.low %v1011_v41, %v1015_v43 }
 0x136   : > { %2039 = vmatmul.mubr.bf16.gmra.mrb[64].mxu0 %v2788_v58  ;;  %2882 = vmatprep.mubr.msk.bf16.mxu1 %vm1657_vm7, %v2791_v59  ;;  %v2852_v58 = vcombine.low %v1018_v44, %v1022_v48  ;;  %v2855_v59 = vcombine.high %v1019_v56, %v1023_v57 }
 0x137   : > { %2046 = vmatprep.mubr.bf16.mxu0 %v2797_v60  ;;  %v2861_v60 = vcombine.high %v1026_v47, %v1030_v51 }
 0x13d   : > { %2184 = vmatmul.mubr.bf16.gmra.mrb[64].mxu1 %v2790_v1  ;;  %v2854_v1 = vcombine.low %v1019_v56, %v1023_v57 }
 0x13e   : > { %2047 = vmatmul.mubr.bf16.gmra.mrb[68].mxu0 %v2796_v2  ;;  %2883 = vmatprep.mubr.msk.bf16.mxu1 %vm1657_vm7, %v2799_v3  ;;  %v2860_v2 = vcombine.low %v1026_v47, %v1030_v51  ;;  %v2863_v3 = vcombine.high %v1027_v61, %v1031_v62 }
 0x13f   : > { %2054 = vmatprep.mubr.bf16.mxu0 %v2805_v4  ;;  %v2869_v4 = vcombine.high %v1034_v63, %v1038_v0 }
 0x145   : > { %2192 = vmatmul.mubr.bf16.gmra.mrb[68].mxu1 %v2798_v8  ;;  %v2862_v8 = vcombine.low %v1027_v61, %v1031_v62 }
 0x146   : > { %2055 = vmatmul.mubr.bf16.gmra.mrb[72].mxu0 %v2804_v9  ;;  %2884 = vmatprep.mubr.msk.bf16.mxu1 %vm1657_vm7, %v2807_v10  ;;  %v2868_v9 = vcombine.low %v1034_v63, %v1038_v0  ;;  %v2871_v10 = vcombine.high %v1035_v5, %v1039_v6 }
 0x147   : > { %2062 = vmatprep.mubr.bf16.mxu0 %v2813_v11  ;;  %v2877_v11 = vcombine.high %v1042_v42, %v1046_v7 }
 0x14d   : > { %2200 = vmatmul.mubr.bf16.gmra.mrb[72].mxu1 %v2806_v16  ;;  %v2876_v16 = vcombine.low %v1042_v42, %v1046_v7 }
 0x14e   : > { %2063 = vmatmul.mubr.bf16.gmra.mrb[76].mxu0 %v2812_v17  ;;  %2885 = vmatprep.mubr.msk.bf16.mxu1 %vm1657_vm7, %v2815_v18  ;;  %v2879_v17 = vcombine.high %v1043_v12, %v1047_v13 }
 0x14f   : > { %2070 = vmatprep.mubr.bf16.mxu0 %v2821_v19 }
 0x155   : > { %2208 = vmatmul.mubr.bf16.gmra.mrb[76].mxu1 %v2814_v24  ;;  %v2878_v24 = vcombine.low %v1043_v12, %v1047_v13 }
 0x156   : > { %2071 = vmatmul.mubr.bf16.gmra.mrb[80].mxu0 %v2820_v25  ;;  %2886 = vmatprep.mubr.msk.bf16.mxu1 %vm1657_vm7, %v2823_v26 }
 0x157   : > { %2078 = vmatprep.mubr.bf16.mxu0 %v2829_v27 }
 0x15d   : > { %2216 = vmatmul.mubr.bf16.gmra.mrb[80].mxu1 %v2822_v32 }
 0x15e   : > { %2079 = vmatmul.mubr.bf16.gmra.mrb[84].mxu0 %v2828_v33  ;;  %2887 = vmatprep.mubr.msk.bf16.mxu1 %vm1657_vm7, %v2831_v34 }
 0x15f   : > { %2086 = vmatprep.mubr.bf16.mxu0 %v2837_v35 }
 0x165   : > { %2224 = vmatmul.mubr.bf16.gmra.mrb[84].mxu1 %v2830_v49 }
 0x166   : > { %2087 = vmatmul.mubr.bf16.gmra.mrb[88].mxu0 %v2836_v38  ;;  %2888 = vmatprep.mubr.msk.bf16.mxu1 %vm1657_vm7, %v2839_v39 }
 0x167   : > { %2094 = vmatprep.mubr.bf16.mxu0 %v2845_v40 }
 0x16d   : > { %2232 = vmatmul.mubr.bf16.gmra.mrb[88].mxu1 %v2838_v50 }
 0x16e   : > { %2095 = vmatmul.mubr.bf16.gmra.mrb[92].mxu0 %v2844_v52  ;;  %2889 = vmatprep.mubr.msk.bf16.mxu1 %vm1657_vm7, %v2847_v54 }
 0x16f   : > { %2102 = vmatprep.mubr.bf16.mxu0 %v2853_v55 }
 0x175   : > { %2240 = vmatmul.mubr.bf16.gmra.mrb[92].mxu1 %v2846_v53 }
 0x176   : > { %2103 = vmatmul.mubr.bf16.gmra.mrb[96].mxu0 %v2852_v58  ;;  %2890 = vmatprep.mubr.msk.bf16.mxu1 %vm1657_vm7, %v2855_v59 }
 0x177   : > { %2110 = vmatprep.mubr.bf16.mxu0 %v2861_v60 }
 0x17d   : > { %2248 = vmatmul.mubr.bf16.gmra.mrb[96].mxu1 %v2854_v1 }
 0x17e   : > { %2111 = vmatmul.mubr.bf16.gmra.mrb[100].mxu0 %v2860_v2  ;;  %2891 = vmatprep.mubr.msk.bf16.mxu1 %vm1657_vm7, %v2863_v3 }
 0x17f   : > { %2118 = vmatprep.mubr.bf16.mxu0 %v2869_v4 }
 0x185   : > { %2256 = vmatmul.mubr.bf16.gmra.mrb[100].mxu1 %v2862_v8 }
 0x186   : > { %2119 = vmatmul.mubr.bf16.gmra.mrb[104].mxu0 %v2868_v9  ;;  %2892 = vmatprep.mubr.msk.bf16.mxu1 %vm1657_vm7, %v2871_v10 }
 0x187   : > { %2126 = vmatprep.mubr.bf16.mxu0 %v2877_v11 }
 0x189   : > { %v2913_v15 = vpop.f32.mrb[0].mxu0 }
 0x18a   : > { %v2914_v18 = vpop.f32.mrb[1].mxu0 }
 0x18b   : > { %v2915_v19 = vadd.f32 %v2914_v18, %v2913_v15  ;;  %v2916_v20 = vpop.f32.mrb[2].mxu0 }
 0x18c   : > { %v2917_v21 = vpop.f32.mrb[3].mxu0 }
 0x18d   : > { %2264 = vmatmul.mubr.bf16.gmra.mrb[104].mxu1 %v2870_v14  ;;  %v2918_v22 = vadd.f32 %v2917_v21, %v2916_v20 }
 0x18e   : > { %2127 = vmatmul.mubr.bf16.gmra.mrb[108].mxu0 %v2876_v16  ;;  %2893 = vmatprep.mubr.msk.bf16.mxu1 %vm1657_vm7, %v2879_v17 }
 0x190   : > { %v3013_v23 = vpop.f32.mrb[0].mxu1 }
 0x191   : > { %v3014_v25 = vpop.f32.mrb[1].mxu1  ;;  %v2919_v26 = vpop.f32.mrb[4].mxu0 }
 0x192   : > { %v3015_v27 = vadd.f32 %v3014_v25, %v3013_v23  ;;  %v3016_v28 = vpop.f32.mrb[2].mxu1  ;;  %v2920_v29 = vpop.f32.mrb[5].mxu0 }
 0x193   : > { %v3017_v30 = vpop.f32.mrb[3].mxu1  ;;  %v2921_v31 = vadd.f32 %v2920_v29, %v2919_v26  ;;  %v2922_v32 = vpop.f32.mrb[6].mxu0 }
 0x194   : > { %v3957_v33 = vadd.f32 %v3015_v27, %v2915_v19  ;;  %v3018_v34 = vadd.f32 %v3017_v30, %v3016_v28  ;;  %v2923_v35 = vpop.f32.mrb[7].mxu0 }
 0x195   : > { %2272 = vmatmul.mubr.bf16.gmra.mrb[108].mxu1 %v2878_v24  ;;  %v2924_v36 = vadd.f32 %v2923_v35, %v2922_v32 }
 0x196   : > { %v3959_v37 = vadd.f32 %v3018_v34, %v2918_v22 }
 0x198   : > { %v3019_v45 = vpop.f32.mrb[4].mxu1 }
 0x199   : > { %v3020_v46 = vpop.f32.mrb[5].mxu1  ;;  %v2925_v49 = vpop.f32.mrb[8].mxu0 }
 0x19a   : > { %v3021_v38 = vadd.f32 %v3020_v46, %v3019_v45  ;;  %v3022_v39 = vpop.f32.mrb[6].mxu1  ;;  %v2926_v40 = vpop.f32.mrb[9].mxu0 }
 0x19b   : > { %v3023_v41 = vpop.f32.mrb[7].mxu1  ;;  %v2927_v43 = vadd.f32 %v2926_v40, %v2925_v49  ;;  %v2928_v44 = vpop.f32.mrb[10].mxu0 }
 0x19c   : > { %v3961_v48 = vadd.f32 %v3021_v38, %v2921_v31  ;;  %v3024_v50 = vadd.f32 %v3023_v41, %v3022_v39  ;;  %v2929_v52 = vpop.f32.mrb[11].mxu0 }
 0x19d   : > { %v2930_v54 = vadd.f32 %v2929_v52, %v2928_v44 }
 0x19e   : > { %v3963_v55 = vadd.f32 %v3024_v50, %v2924_v36 }
 0x1a0   : > { %v3025_v56 = vpop.f32.mrb[8].mxu1 }
 0x1a1   : > { %v3026_v57 = vpop.f32.mrb[9].mxu1  ;;  %v2931_v47 = vpop.f32.mrb[12].mxu0 }
 0x1a2   : > { %v3027_v51 = vadd.f32 %v3026_v57, %v3025_v56  ;;  %v3028_v53 = vpop.f32.mrb[10].mxu1  ;;  %v2932_v58 = vpop.f32.mrb[13].mxu0 }
 0x1a3   : > { %v3029_v59 = vpop.f32.mrb[11].mxu1  ;;  %v2933_v60 = vadd.f32 %v2932_v58, %v2931_v47  ;;  %v2934_v61 = vpop.f32.mrb[14].mxu0 }
 0x1a4   : > { %v3965_v62 = vadd.f32 %v3027_v51, %v2927_v43  ;;  %v3030_v63 = vadd.f32 %v3029_v59, %v3028_v53  ;;  %v2935_v0 = vpop.f32.mrb[15].mxu0 }
 0x1a5   : > { %v2936_v1 = vadd.f32 %v2935_v0, %v2934_v61 }
 0x1a6   : > { %v3967_v2 = vadd.f32 %v3030_v63, %v2930_v54 }
 0x1a8   : > { %v3031_v3 = vpop.f32.mrb[12].mxu1 }
 0x1a9   : > { %v3032_v4 = vpop.f32.mrb[13].mxu1  ;;  %v2937_v5 = vpop.f32.mrb[16].mxu0 }
 0x1aa   : > { %v3033_v6 = vadd.f32 %v3032_v4, %v3031_v3  ;;  %v3034_v42 = vpop.f32.mrb[14].mxu1  ;;  %v2938_v7 = vpop.f32.mrb[17].mxu0 }
 0x1ab   : > { %v3035_v8 = vpop.f32.mrb[15].mxu1  ;;  %v2939_v9 = vadd.f32 %v2938_v7, %v2937_v5  ;;  %v2940_v10 = vpop.f32.mrb[18].mxu0 }
 0x1ac   : > { %v3969_v11 = vadd.f32 %v3033_v6, %v2933_v60  ;;  %v3036_v12 = vadd.f32 %v3035_v8, %v3034_v42  ;;  %v2941_v13 = vpop.f32.mrb[19].mxu0 }
 0x1ad   : > { %v2942_v14 = vadd.f32 %v2941_v13, %v2940_v10 }
 0x1ae   : > { %v3971_v15 = vadd.f32 %v3036_v12, %v2936_v1 }
 0x1b0   : > { %v3037_v16 = vpop.f32.mrb[16].mxu1 }
 0x1b1   : > { %v3038_v17 = vpop.f32.mrb[17].mxu1  ;;  %v2943_v18 = vpop.f32.mrb[20].mxu0 }
 0x1b2   : > { %v3039_v19 = vadd.f32 %v3038_v17, %v3037_v16  ;;  %v3040_v20 = vpop.f32.mrb[18].mxu1  ;;  %v2944_v21 = vpop.f32.mrb[21].mxu0 }
 0x1b3   : > { %v3041_v22 = vpop.f32.mrb[19].mxu1  ;;  %v2945_v23 = vadd.f32 %v2944_v21, %v2943_v18  ;;  %v2946_v24 = vpop.f32.mrb[22].mxu0 }
 0x1b4   : > { %v3973_v25 = vadd.f32 %v3039_v19, %v2939_v9  ;;  %v3042_v26 = vadd.f32 %v3041_v22, %v3040_v20  ;;  %v2947_v27 = vpop.f32.mrb[23].mxu0 }
 0x1b5   : > { %v2948_v28 = vadd.f32 %v2947_v27, %v2946_v24 }
 0x1b6   : > { %v3975_v29 = vadd.f32 %v3042_v26, %v2942_v14 }
 0x1b8   : > { %v3043_v30 = vpop.f32.mrb[20].mxu1 }
 0x1b9   : > { %v3044_v31 = vpop.f32.mrb[21].mxu1  ;;  %v2949_v32 = vpop.f32.mrb[24].mxu0 }
 0x1ba   : > { %v3045_v34 = vadd.f32 %v3044_v31, %v3043_v30  ;;  %v3046_v35 = vpop.f32.mrb[22].mxu1  ;;  %v2950_v36 = vpop.f32.mrb[25].mxu0 }
 0x1bb   : > { %v3047_v45 = vpop.f32.mrb[23].mxu1  ;;  %v2951_v46 = vadd.f32 %v2950_v36, %v2949_v32  ;;  %v2952_v49 = vpop.f32.mrb[26].mxu0 }
 0x1bc   : > { %v3977_v38 = vadd.f32 %v3045_v34, %v2945_v23  ;;  %v3048_v39 = vadd.f32 %v3047_v45, %v3046_v35  ;;  %v2953_v40 = vpop.f32.mrb[27].mxu0 }
 0x1bd   : > { %v2954_v41 = vadd.f32 %v2953_v40, %v2952_v49 }
 0x1be   : > { %v3979_v43 = vadd.f32 %v3048_v39, %v2948_v28 }
 0x1c0   : > { %v3049_v44 = vpop.f32.mrb[24].mxu1 }
 0x1c1   : > { %v3050_v50 = vpop.f32.mrb[25].mxu1  ;;  %v2955_v52 = vpop.f32.mrb[28].mxu0 }
 0x1c2   : > { %v3051_v54 = vadd.f32 %v3050_v50, %v3049_v44  ;;  %v3052_v56 = vpop.f32.mrb[26].mxu1  ;;  %v2956_v57 = vpop.f32.mrb[29].mxu0 }
 0x1c3   : > { %v3053_v47 = vpop.f32.mrb[27].mxu1  ;;  %v2957_v51 = vadd.f32 %v2956_v57, %v2955_v52  ;;  %v2958_v53 = vpop.f32.mrb[30].mxu0 }
 0x1c4   : > { %v3981_v58 = vadd.f32 %v3051_v54, %v2951_v46  ;;  %v3054_v59 = vadd.f32 %v3053_v47, %v3052_v56  ;;  %v2959_v60 = vpop.f32.mrb[31].mxu0 }
 0x1c5   : > { %v2960_v61 = vadd.f32 %v2959_v60, %v2958_v53 }
 0x1c6   : > { %v3983_v63 = vadd.f32 %v3054_v59, %v2954_v41 }
 0x1c8   : > { %v3055_v0 = vpop.f32.mrb[28].mxu1 }
 0x1c9   : > { %v3056_v1 = vpop.f32.mrb[29].mxu1  ;;  %v2961_v3 = vpop.f32.mrb[32].mxu0 }
 0x1ca   : > { %v3057_v4 = vadd.f32 %v3056_v1, %v3055_v0  ;;  %v3058_v5 = vpop.f32.mrb[30].mxu1  ;;  %v2962_v6 = vpop.f32.mrb[33].mxu0 }
 0x1cb   : > { %v3059_v42 = vpop.f32.mrb[31].mxu1  ;;  %v2963_v7 = vadd.f32 %v2962_v6, %v2961_v3  ;;  %v2964_v8 = vpop.f32.mrb[34].mxu0 }
 0x1cc   : > { %v3985_v9 = vadd.f32 %v3057_v4, %v2957_v51  ;;  %v3060_v10 = vadd.f32 %v3059_v42, %v3058_v5  ;;  %v2965_v12 = vpop.f32.mrb[35].mxu0 }
 0x1cd   : > { %v2966_v13 = vadd.f32 %v2965_v12, %v2964_v8 }
 0x1ce   : > { %v3987_v14 = vadd.f32 %v3060_v10, %v2960_v61 }
 0x1d0   : > { %v3061_v16 = vpop.f32.mrb[32].mxu1 }
 0x1d1   : > { %v3062_v17 = vpop.f32.mrb[33].mxu1  ;;  %v2967_v18 = vpop.f32.mrb[36].mxu0 }
 0x1d2   : > { %v3063_v19 = vadd.f32 %v3062_v17, %v3061_v16  ;;  %v3064_v20 = vpop.f32.mrb[34].mxu1  ;;  %v2968_v21 = vpop.f32.mrb[37].mxu0 }
 0x1d3   : > { %v3065_v22 = vpop.f32.mrb[35].mxu1  ;;  %v2969_v23 = vadd.f32 %v2968_v21, %v2967_v18  ;;  %v2970_v24 = vpop.f32.mrb[38].mxu0 }
 0x1d4   : > { %v3989_v26 = vadd.f32 %v3063_v19, %v2963_v7  ;;  %v3066_v27 = vadd.f32 %v3065_v22, %v3064_v20  ;;  %v2971_v28 = vpop.f32.mrb[39].mxu0 }
 0x1d5   : > { %v2972_v30 = vadd.f32 %v2971_v28, %v2970_v24 }
 0x1d6   : > { %v3991_v31 = vadd.f32 %v3066_v27, %v2966_v13 }
 0x1d8   : > { %v3067_v32 = vpop.f32.mrb[36].mxu1 }
 0x1d9   : > { %v3068_v34 = vpop.f32.mrb[37].mxu1  ;;  %v2973_v35 = vpop.f32.mrb[40].mxu0 }
 0x1da   : > { %v3069_v36 = vadd.f32 %v3068_v34, %v3067_v32  ;;  %v3070_v45 = vpop.f32.mrb[38].mxu1  ;;  %v2974_v46 = vpop.f32.mrb[41].mxu0 }
 0x1db   : > { %v3071_v49 = vpop.f32.mrb[39].mxu1  ;;  %v2975_v39 = vadd.f32 %v2974_v46, %v2973_v35  ;;  %v2976_v40 = vpop.f32.mrb[42].mxu0 }
 0x1dc   : > { %v3993_v41 = vadd.f32 %v3069_v36, %v2969_v23  ;;  %v3072_v44 = vadd.f32 %v3071_v49, %v3070_v45  ;;  %v2977_v50 = vpop.f32.mrb[43].mxu0 }
 0x1dd   : > { %v2978_v52 = vadd.f32 %v2977_v50, %v2976_v40  ;;  %v3298_v50 = vmov 0.0  }
 0x1de   : > { %v3995_v54 = vadd.f32 %v3072_v44, %v2972_v30  ;;  %2319 = vst.msk [vmem:[#allocation4 + $0x8] sm:$0xff] %vm2318_vm8, %v3298_v50  ;;  %2321 = vst.msk [vmem:[#allocation4 + $0x18] sm:$0xff] %vm2318_vm8, %v3298_v50 }
 0x1df   : > { %2323 = vst.msk [vmem:[#allocation4 + $0x28] sm:$0xff] %vm2318_vm8, %v3298_v50  ;;  %2325 = vst.msk [vmem:[#allocation4 + $0x38] sm:$0xff] %vm2318_vm8, %v3298_v50 }
 0x1e0   : > { %v3073_v56 = vpop.f32.mrb[40].mxu1 }
 0x1e1   : > { %v3074_v57 = vpop.f32.mrb[41].mxu1  ;;  %v2979_v47 = vpop.f32.mrb[44].mxu0 }
 0x1e2   : > { %v3075_v51 = vadd.f32 %v3074_v57, %v3073_v56  ;;  %v3076_v53 = vpop.f32.mrb[42].mxu1  ;;  %v2980_v59 = vpop.f32.mrb[45].mxu0 }
 0x1e3   : > { %v3077_v60 = vpop.f32.mrb[43].mxu1  ;;  %v2981_v61 = vadd.f32 %v2980_v59, %v2979_v47  ;;  %v2982_v0 = vpop.f32.mrb[46].mxu0 }
 0x1e4   : > { %v3997_v1 = vadd.f32 %v3075_v51, %v2975_v39  ;;  %v3078_v3 = vadd.f32 %v3077_v60, %v3076_v53  ;;  %v2983_v4 = vpop.f32.mrb[47].mxu0 }
 0x1e5   : > { %v2984_v5 = vadd.f32 %v2983_v4, %v2982_v0 }
 0x1e6   : > { %v3999_v6 = vadd.f32 %v3078_v3, %v2978_v52 }
 0x1e8   : > { %v3079_v42 = vpop.f32.mrb[44].mxu1 }
 0x1e9   : > { %v2985_v7 = vpop.f32.mrb[48].mxu0  ;;  %v3080_v8 = vpop.f32.mrb[45].mxu1 }
 0x1ea   : > { %v2986_v10 = vpop.f32.mrb[49].mxu0  ;;  %v3081_v12 = vadd.f32 %v3080_v8, %v3079_v42  ;;  %v3082_v13 = vpop.f32.mrb[46].mxu1 }
 0x1eb   : > { %v2987_v16 = vadd.f32 %v2986_v10, %v2985_v7  ;;  %v2988_v17 = vpop.f32.mrb[50].mxu0  ;;  %v3083_v18 = vpop.f32.mrb[47].mxu1 }
 0x1ec   : > { %v4001_v19 = vadd.f32 %v3081_v12, %v2981_v61  ;;  %v2989_v20 = vpop.f32.mrb[51].mxu0  ;;  %v3084_v21 = vadd.f32 %v3083_v18, %v3082_v13 }
 0x1ed   : > { %v2990_v22 = vadd.f32 %v2989_v20, %v2988_v17 }
 0x1ee   : > { %v4003_v23 = vadd.f32 %v3084_v21, %v2984_v5 }
 0x1f0   : > { %v3085_v24 = vpop.f32.mrb[48].mxu1 }
 0x1f1   : > { %v2991_v27 = vpop.f32.mrb[52].mxu0  ;;  %v3086_v28 = vpop.f32.mrb[49].mxu1 }
 0x1f2   : > { %v2992_v30 = vpop.f32.mrb[53].mxu0  ;;  %v3087_v32 = vadd.f32 %v3086_v28, %v3085_v24  ;;  %v3088_v34 = vpop.f32.mrb[50].mxu1 }
 0x1f3   : > { %v2993_v35 = vadd.f32 %v2992_v30, %v2991_v27  ;;  %v2994_v36 = vpop.f32.mrb[54].mxu0  ;;  %v3089_v45 = vpop.f32.mrb[51].mxu1 }
 0x1f4   : > { %v2995_v46 = vpop.f32.mrb[55].mxu0  ;;  %v4005_v49 = vadd.f32 %v3087_v32, %v2987_v16  ;;  %v3090_v39 = vadd.f32 %v3089_v45, %v3088_v34 }
 0x1f5   : > { %v2996_v40 = vadd.f32 %v2995_v46, %v2994_v36 }
 0x1f6   : > { %v4007_v44 = vadd.f32 %v3090_v39, %v2990_v22 }
 0x1f8   : > { %v3091_v52 = vpop.f32.mrb[52].mxu1 }
 0x1f9   : > { %v3113_v56 = vpop.f32.mrb[56].mxu0  ;;  %v3092_v57 = vpop.f32.mrb[53].mxu1 }
 0x1fa   : > { %v3114_v47 = vpop.f32.mrb[57].mxu0  ;;  %v3093_v51 = vadd.f32 %v3092_v57, %v3091_v52  ;;  %v3094_v53 = vpop.f32.mrb[54].mxu1 }
 0x1fb   : > { %v3115_v59 = vadd.f32 %v3114_v47, %v3113_v56  ;;  %v3116_v60 = vpop.f32.mrb[58].mxu0  ;;  %v3095_v61 = vpop.f32.mrb[55].mxu1 }
 0x1fc   : > { %v3117_v0 = vpop.f32.mrb[59].mxu0  ;;  %v4017_v3 = vadd.f32 %v3093_v51, %v2993_v35  ;;  %v3096_v4 = vadd.f32 %v3095_v61, %v3094_v53 }
 0x1fd   : > { %v3118_v5 = vadd.f32 %v3117_v0, %v3116_v60  ;;  %v2025_v42 = vadd.f32 %v3115_v59, %v3957_v33 }
 0x1fe   : > { %v4020_v7 = vadd.f32 %v3096_v4, %v2996_v40 }
 0x1ff   : > { %v2028_v8 = vadd.f32 %v3118_v5, %v3959_v37 }
 0x200   : > { %v2169_v10 = vpop.f32.mrb[56].mxu1 }
 0x201   : > { %v2170_v12 = vadd.f32 %v2169_v10, %v2025_v42  ;;  %v3119_v13 = vpop.f32.mrb[60].mxu0  ;;  %v2171_v16 = vpop.f32.mrb[57].mxu1 }
 0x202   : > { %v3120_v17 = vpop.f32.mrb[61].mxu0  ;;  %v2172_v18 = vpop.f32.mrb[58].mxu1 }
 0x203   : > { %2280 = vst.msk [vmem:[#allocation3] sm:$0xff] %vm217_vm0, %v2170_v12  ;;  %v3121_v20 = vadd.f32 %v3120_v17, %v3119_v13  ;;  %v2173_v21 = vadd.f32 %v2172_v18, %v2028_v8  ;;  %v3122_v22 = vpop.f32.mrb[62].mxu0  ;;  %v2174_v24 = vpop.f32.mrb[59].mxu1 }
 0x204   : > { %v3123_v27 = vpop.f32.mrb[63].mxu0 }
 0x205   : > { %2281 = vst.msk [vmem:[#allocation3 + $0x8] sm:$0xff] %vm217_vm0, %v2173_v21  ;;  %v3124_v33 = vadd.f32 %v3123_v27, %v3122_v22  ;;  %v2033_v28 = vadd.f32 %v3121_v20, %v3961_v48 }
 0x207   : > { %v2036_v37 = vadd.f32 %v3124_v33, %v3963_v55 }
 0x208   : > { %v2177_v30 = vpop.f32.mrb[60].mxu1 }
 0x209   : > { %v2178_v32 = vadd.f32 %v2177_v30, %v2033_v28  ;;  %v3125_v34 = vpop.f32.mrb[64].mxu0  ;;  %v2179_v35 = vpop.f32.mrb[61].mxu1 }
 0x20a   : > { %v3126_v36 = vpop.f32.mrb[65].mxu0  ;;  %v2180_v45 = vpop.f32.mrb[62].mxu1  ;;  %v2308_v46 = vld [vmem:[#allocation3] sm:$0xff] }
 0x20b   : > { %2282 = vst.msk [vmem:[#allocation3 + $0x10] sm:$0xff] %vm217_vm0, %v2178_v32  ;;  %v3127_v39 = vadd.f32 %v3126_v36, %v3125_v34  ;;  %v2181_v40 = vadd.f32 %v2180_v45, %v2036_v37  ;;  %v3128_v52 = vpop.f32.mrb[66].mxu0  ;;  %v2182_v56 = vpop.f32.mrb[63].mxu1  ;;  %2312 = vst.msk [vmem:[#allocation4] sm:$0xff] %vm217_vm0, %v2308_v46 }
 0x20c   : > { %v3129_v57 = vpop.f32.mrb[67].mxu0  ;;  %2317 = vst.msk [vmem:[#allocation4] sm:$0xff] %vm2316_vm9, %v3298_v50  ;;  %v2309_v48 = vld [vmem:[#allocation3 + $0x8] sm:$0xff] }
 0x20d   : > { %2283 = vst.msk [vmem:[#allocation3 + $0x18] sm:$0xff] %vm217_vm0, %v2181_v40  ;;  %v3130_v55 = vadd.f32 %v3129_v57, %v3128_v52  ;;  %v2041_v47 = vadd.f32 %v3127_v39, %v3965_v62  ;;  %2313 = vst.msk [vmem:[#allocation4 + $0x10] sm:$0xff] %vm217_vm0, %v2309_v48 }
 0x20e   : > { %2320 = vst.msk [vmem:[#allocation4 + $0x10] sm:$0xff] %vm2316_vm9, %v3298_v50 }
 0x20f   : > { %v2044_v51 = vadd.f32 %v3130_v55, %v3967_v2 }
 0x210   : > { %v2185_v53 = vpop.f32.mrb[64].mxu1 }
 0x211   : > { %v2186_v59 = vadd.f32 %v2185_v53, %v2041_v47  ;;  %v3131_v60 = vpop.f32.mrb[68].mxu0  ;;  %v2187_v61 = vpop.f32.mrb[65].mxu1 }
 0x212   : > { %v3132_v0 = vpop.f32.mrb[69].mxu0  ;;  %v2188_v4 = vpop.f32.mrb[66].mxu1  ;;  %v2310_v5 = vld [vmem:[#allocation3 + $0x10] sm:$0xff] }
 0x213   : > { %2284 = vst.msk [vmem:[#allocation3 + $0x20] sm:$0xff] %vm217_vm0, %v2186_v59  ;;  %v3133_v42 = vadd.f32 %v3132_v0, %v3131_v60  ;;  %v2189_v8 = vadd.f32 %v2188_v4, %v2044_v51  ;;  %v3134_v10 = vpop.f32.mrb[70].mxu0  ;;  %v2190_v62 = vpop.f32.mrb[67].mxu1  ;;  %2314 = vst.msk [vmem:[#allocation4 + $0x20] sm:$0xff] %vm217_vm0, %v2310_v5 }
 0x214   : > { %v3135_v12 = vpop.f32.mrb[71].mxu0  ;;  %2322 = vst.msk [vmem:[#allocation4 + $0x20] sm:$0xff] %vm2316_vm9, %v3298_v50  ;;  %v2311_v2 = vld [vmem:[#allocation3 + $0x18] sm:$0xff] }
 0x215   : > { %2285 = vst.msk [vmem:[#allocation3 + $0x28] sm:$0xff] %vm217_vm0, %v2189_v8  ;;  %v3136_v13 = vadd.f32 %v3135_v12, %v3134_v10  ;;  %v2049_v16 = vadd.f32 %v3133_v42, %v3969_v11  ;;  %2315 = vst.msk [vmem:[#allocation4 + $0x30] sm:$0xff] %vm217_vm0, %v2311_v2 }
 0x216   : > { %2324 = vst.msk [vmem:[#allocation4 + $0x30] sm:$0xff] %vm2316_vm9, %v3298_v50 }
 0x217   : > { %v2052_v17 = vadd.f32 %v3136_v13, %v3971_v15 }
 0x218   : > { %v2193_v18 = vpop.f32.mrb[68].mxu1 }
 0x219   : > { %v2194_v20 = vadd.f32 %v2193_v18, %v2049_v16  ;;  %v3137_v21 = vpop.f32.mrb[72].mxu0  ;;  %v2195_v22 = vpop.f32.mrb[69].mxu1 }
 0x21a   : > { %v3138_v24 = vpop.f32.mrb[73].mxu0  ;;  %v2196_v27 = vpop.f32.mrb[70].mxu1  ;;  %v2334_v33 = vld [vmem:[#allocation3 + $0x20] sm:$0xff] }
 0x21b   : > { %2286 = vst.msk [vmem:[#allocation3 + $0x30] sm:$0xff] %vm217_vm0, %v2194_v20  ;;  %v3139_v28 = vadd.f32 %v3138_v24, %v3137_v21  ;;  %v2197_v37 = vadd.f32 %v2196_v27, %v2052_v17  ;;  %v3140_v30 = vpop.f32.mrb[74].mxu0  ;;  %2342 = vrot.lane.b32.xlu0 %v2334_v33, %s3299_s11  ;;  %v2198_v11 = vpop.f32.mrb[71].mxu1 }
 0x21c   : > { %v3141_v32 = vpop.f32.mrb[75].mxu0  ;;  %v2335_v34 = vld [vmem:[#allocation3 + $0x28] sm:$0xff] }
 0x21d   : > { %2287 = vst.msk [vmem:[#allocation3 + $0x38] sm:$0xff] %vm217_vm0, %v2197_v37  ;;  %v3142_v15 = vadd.f32 %v3141_v32, %v3140_v30  ;;  %2344 = vrot.lane.b32.xlu1 %v2335_v34, %s3299_s11  ;;  %v2057_v50 = vadd.f32 %v3139_v28, %v3973_v25 }
 0x21f   : > { %v2060_v35 = vadd.f32 %v3142_v15, %v3975_v29 }
 0x220   : > { %v2201_v36 = vpop.f32.mrb[72].mxu1 }
 0x221   : > { %v2202_v45 = vadd.f32 %v2201_v36, %v2057_v50  ;;  %v3143_v46 = vpop.f32.mrb[76].mxu0  ;;  %v2203_v39 = vpop.f32.mrb[73].mxu1 }
 0x222   : > { %v3144_v40 = vpop.f32.mrb[77].mxu0  ;;  %v2204_v52 = vpop.f32.mrb[74].mxu1  ;;  %v2336_v56 = vld [vmem:[#allocation3 + $0x30] sm:$0xff] }
 0x223   : > { %2288 = vst.msk [vmem:[#allocation3 + $0x40] sm:$0xff] %vm217_vm0, %v2202_v45  ;;  %v3145_v57 = vadd.f32 %v3144_v40, %v3143_v46  ;;  %v2205_v48 = vadd.f32 %v2204_v52, %v2060_v35  ;;  %v3146_v55 = vpop.f32.mrb[78].mxu0  ;;  %2346 = vrot.lane.b32.xlu0 %v2336_v56, %s3299_s11  ;;  %v2206_v47 = vpop.f32.mrb[75].mxu1 }
 0x224   : > { %v3147_v51 = vpop.f32.mrb[79].mxu0  ;;  %v2337_v53 = vld [vmem:[#allocation3 + $0x38] sm:$0xff] }
 0x225   : > { %2289 = vst.msk [vmem:[#allocation3 + $0x48] sm:$0xff] %vm217_vm0, %v2205_v48  ;;  %v3148_v25 = vadd.f32 %v3147_v51, %v3146_v55  ;;  %2348 = vrot.lane.b32.xlu1 %v2337_v53, %s3299_s11  ;;  %v2065_v29 = vadd.f32 %v3145_v57, %v3977_v38 }
 0x227   : > { %v2068_v59 = vadd.f32 %v3148_v25, %v3979_v43 }
 0x228   : > { %v2209_v60 = vpop.f32.mrb[76].mxu1 }
 0x229   : > { %v2210_v61 = vadd.f32 %v2209_v60, %v2065_v29  ;;  %v3149_v0 = vpop.f32.mrb[80].mxu0  ;;  %v2211_v4 = vpop.f32.mrb[77].mxu1 }
 0x22a   : > { %v3150_v5 = vpop.f32.mrb[81].mxu0  ;;  %v2212_v42 = vpop.f32.mrb[78].mxu1  ;;  %v2380_v8 = vld [vmem:[#allocation3 + $0x40] sm:$0xff] }
 0x22b   : > { %2290 = vst.msk [vmem:[#allocation3 + $0x50] sm:$0xff] %vm217_vm0, %v2210_v61  ;;  %v3151_v10 = vadd.f32 %v3150_v5, %v3149_v0  ;;  %v2213_v62 = vadd.f32 %v2212_v42, %v2068_v59  ;;  %v3152_v12 = vpop.f32.mrb[82].mxu0  ;;  %2388 = vrot.lane.b32.xlu0 %v2380_v8, %s3300_s12  ;;  %v2214_v2 = vpop.f32.mrb[79].mxu1 }
 0x22c   : > { %v3153_v13 = vpop.f32.mrb[83].mxu0  ;;  %v2381_v16 = vld [vmem:[#allocation3 + $0x48] sm:$0xff] }
 0x22d   : > { %2291 = vst.msk [vmem:[#allocation3 + $0x58] sm:$0xff] %vm217_vm0, %v2213_v62  ;;  %v3154_v38 = vadd.f32 %v3153_v13, %v3152_v12  ;;  %2390 = vrot.lane.b32.xlu1 %v2381_v16, %s3300_s12  ;;  %v2073_v43 = vadd.f32 %v3151_v10, %v3981_v58 }
 0x22f   : > { %v2076_v17 = vadd.f32 %v3154_v38, %v3983_v63 }
 0x230   : > { %v2217_v18 = vpop.f32.mrb[80].mxu1 }
 0x231   : > { %v2218_v20 = vadd.f32 %v2217_v18, %v2073_v43  ;;  %v3155_v21 = vpop.f32.mrb[84].mxu0  ;;  %v2219_v22 = vpop.f32.mrb[81].mxu1 }
 0x232   : > { %v3156_v24 = vpop.f32.mrb[85].mxu0  ;;  %v2220_v27 = vpop.f32.mrb[82].mxu1  ;;  %v2382_v33 = vld [vmem:[#allocation3 + $0x50] sm:$0xff] }
 0x233   : > { %2292 = vst.msk [vmem:[#allocation3 + $0x60] sm:$0xff] %vm217_vm0, %v2218_v20  ;;  %v3157_v28 = vadd.f32 %v3156_v24, %v3155_v21  ;;  %v2221_v37 = vadd.f32 %v2220_v27, %v2076_v17  ;;  %v3158_v30 = vpop.f32.mrb[86].mxu0  ;;  %2392 = vrot.lane.b32.xlu0 %v2382_v33, %s3300_s12  ;;  %v2222_v11 = vpop.f32.mrb[83].mxu1 }
 0x234   : > { %v3159_v32 = vpop.f32.mrb[87].mxu0  ;;  %v2383_v34 = vld [vmem:[#allocation3 + $0x58] sm:$0xff] }
 0x235   : > { %2293 = vst.msk [vmem:[#allocation3 + $0x68] sm:$0xff] %vm217_vm0, %v2221_v37  ;;  %v3160_v58 = vadd.f32 %v3159_v32, %v3158_v30  ;;  %2394 = vrot.lane.b32.xlu1 %v2383_v34, %s3300_s12  ;;  %v2081_v63 = vadd.f32 %v3157_v28, %v3985_v9 }
 0x237   : > { %v2084_v15 = vadd.f32 %v3160_v58, %v3987_v14 }
 0x238   : > { %v2225_v50 = vpop.f32.mrb[84].mxu1 }
 0x239   : > { %v2226_v35 = vadd.f32 %v2225_v50, %v2081_v63  ;;  %v3161_v36 = vpop.f32.mrb[88].mxu0  ;;  %v2227_v45 = vpop.f32.mrb[85].mxu1 }
 0x23a   : > { %v3162_v46 = vpop.f32.mrb[89].mxu0  ;;  %v2228_v39 = vpop.f32.mrb[86].mxu1  ;;  %v2426_v40 = vld [vmem:[#allocation3 + $0x60] sm:$0xff] }
 0x23b   : > { %2294 = vst.msk [vmem:[#allocation3 + $0x70] sm:$0xff] %vm217_vm0, %v2226_v35  ;;  %v3163_v52 = vadd.f32 %v3162_v46, %v3161_v36  ;;  %v2229_v56 = vadd.f32 %v2228_v39, %v2084_v15  ;;  %v3164_v57 = vpop.f32.mrb[90].mxu0  ;;  %2434 = vrot.lane.b32.xlu0 %v2426_v40, %s3301_s13  ;;  %v2230_v48 = vpop.f32.mrb[87].mxu1 }
 0x23c   : > { %v3165_v55 = vpop.f32.mrb[91].mxu0  ;;  %v2427_v47 = vld [vmem:[#allocation3 + $0x68] sm:$0xff] }
 0x23d   : > { %2295 = vst.msk [vmem:[#allocation3 + $0x78] sm:$0xff] %vm217_vm0, %v2229_v56  ;;  %v3166_v9 = vadd.f32 %v3165_v55, %v3164_v57  ;;  %2436 = vrot.lane.b32.xlu1 %v2427_v47, %s3301_s13  ;;  %v2089_v14 = vadd.f32 %v3163_v52, %v3989_v26 }
 0x23f   : > { %v2092_v51 = vadd.f32 %v3166_v9, %v3991_v31 }
 0x240   : > { %v2233_v53 = vpop.f32.mrb[88].mxu1 }
 0x241   : > { %v2234_v25 = vadd.f32 %v2233_v53, %v2089_v14  ;;  %v3167_v29 = vpop.f32.mrb[92].mxu0  ;;  %v2235_v59 = vpop.f32.mrb[89].mxu1 }
 0x242   : > { %v3168_v60 = vpop.f32.mrb[93].mxu0  ;;  %v2236_v61 = vpop.f32.mrb[90].mxu1  ;;  %v2428_v0 = vld [vmem:[#allocation3 + $0x70] sm:$0xff] }
 0x243   : > { %2296 = vst.msk [vmem:[#allocation3 + $0x80] sm:$0xff] %vm217_vm0, %v2234_v25  ;;  %v3169_v4 = vadd.f32 %v3168_v60, %v3167_v29  ;;  %v2237_v5 = vadd.f32 %v2236_v61, %v2092_v51  ;;  %v3170_v42 = vpop.f32.mrb[94].mxu0  ;;  %2438 = vrot.lane.b32.xlu0 %v2428_v0, %s3301_s13  ;;  %v2238_v8 = vpop.f32.mrb[91].mxu1 }
 0x244   : > { %v3171_v10 = vpop.f32.mrb[95].mxu0  ;;  %v2429_v62 = vld [vmem:[#allocation3 + $0x78] sm:$0xff] }
 0x245   : > { %2297 = vst.msk [vmem:[#allocation3 + $0x88] sm:$0xff] %vm217_vm0, %v2237_v5  ;;  %v3172_v26 = vadd.f32 %v3171_v10, %v3170_v42  ;;  %2440 = vrot.lane.b32.xlu1 %v2429_v62, %s3301_s13  ;;  %v2097_v31 = vadd.f32 %v3169_v4, %v3993_v41 }
 0x247   : > { %v2100_v12 = vadd.f32 %v3172_v26, %v3995_v54 }
 0x248   : > { %v2241_v2 = vpop.f32.mrb[92].mxu1 }
 0x249   : > { %v2242_v13 = vadd.f32 %v2241_v2, %v2097_v31  ;;  %v3173_v16 = vpop.f32.mrb[96].mxu0  ;;  %v2243_v38 = vpop.f32.mrb[93].mxu1 }
 0x24a   : > { %v3174_v43 = vpop.f32.mrb[97].mxu0  ;;  %v2244_v17 = vpop.f32.mrb[94].mxu1  ;;  %v2472_v18 = vld [vmem:[#allocation3 + $0x80] sm:$0xff] }
 0x24b   : > { %2298 = vst.msk [vmem:[#allocation3 + $0x90] sm:$0xff] %vm217_vm0, %v2242_v13  ;;  %v3175_v20 = vadd.f32 %v3174_v43, %v3173_v16  ;;  %v2245_v21 = vadd.f32 %v2244_v17, %v2100_v12  ;;  %v3176_v22 = vpop.f32.mrb[98].mxu0  ;;  %2480 = vrot.lane.b32.xlu0 %v2472_v18, %s3302_s14  ;;  %v2246_v24 = vpop.f32.mrb[95].mxu1 }
 0x24c   : > { %v3177_v27 = vpop.f32.mrb[99].mxu0  ;;  %v2473_v33 = vld [vmem:[#allocation3 + $0x88] sm:$0xff] }
 0x24d   : > { %2299 = vst.msk [vmem:[#allocation3 + $0x98] sm:$0xff] %vm217_vm0, %v2245_v21  ;;  %v3178_v41 = vadd.f32 %v3177_v27, %v3176_v22  ;;  %2482 = vrot.lane.b32.xlu1 %v2473_v33, %s3302_s14  ;;  %v2105_v54 = vadd.f32 %v3175_v20, %v3997_v1  ;;  %v2326_v27 = vld [vmem:[#allocation4] sm:$0xff] }
 0x24f   : > { %v2108_v28 = vadd.f32 %v3178_v41, %v3999_v6  ;;  %v2329_v41 = vld [vmem:[#allocation4 + $0x18] sm:$0xff] }
 0x250   : > { %v2249_v37 = vpop.f32.mrb[96].mxu1 }
 0x251   : > { %v2250_v30 = vadd.f32 %v2249_v37, %v2105_v54  ;;  %v3179_v11 = vpop.f32.mrb[100].mxu0  ;;  %v2251_v32 = vpop.f32.mrb[97].mxu1  ;;  %v2328_v54 = vld [vmem:[#allocation4 + $0x10] sm:$0xff] }
 0x252   : > { %v3180_v34 = vpop.f32.mrb[101].mxu0  ;;  %v2252_v58 = vpop.f32.mrb[98].mxu1  ;;  %v2474_v63 = vld [vmem:[#allocation3 + $0x90] sm:$0xff] }
 0x253   : > { %2300 = vst.msk [vmem:[#allocation3 + $0xa0] sm:$0xff] %vm217_vm0, %v2250_v30  ;;  %v3181_v15 = vadd.f32 %v3180_v34, %v3179_v11  ;;  %v2253_v50 = vadd.f32 %v2252_v58, %v2108_v28  ;;  %v3182_v35 = vpop.f32.mrb[102].mxu0  ;;  %2484 = vrot.lane.b32.xlu0 %v2474_v63, %s3302_s14  ;;  %v2254_v36 = vpop.f32.mrb[99].mxu1  ;;  %v2331_v34 = vld [vmem:[#allocation4 + $0x28] sm:$0xff]  ;;  %v2330_v58 = vld [vmem:[#allocation4 + $0x20] sm:$0xff] }
 0x254   : > { %v3183_v45 = vpop.f32.mrb[103].mxu0  ;;  %v2475_v46 = vld [vmem:[#allocation3 + $0x98] sm:$0xff] }
 0x255   : > { %2301 = vst.msk [vmem:[#allocation3 + $0xa8] sm:$0xff] %vm217_vm0, %v2253_v50  ;;  %v3184_v1 = vadd.f32 %v3183_v45, %v3182_v35  ;;  %2486 = vrot.lane.b32.xlu1 %v2475_v46, %s3302_s14  ;;  %v2113_v6 = vadd.f32 %v3181_v15, %v4001_v19  ;;  %v2333_v15 = vld [vmem:[#allocation4 + $0x38] sm:$0xff]  ;;  %v2332_v50 = vld [vmem:[#allocation4 + $0x30] sm:$0xff] }
 0x257   : > { %v2116_v39 = vadd.f32 %v3184_v1, %v4003_v23 }
 0x258   : > { %v2257_v40 = vpop.f32.mrb[100].mxu1 }
 0x259   : > { %v2258_v52 = vadd.f32 %v2257_v40, %v2113_v6  ;;  %v3185_v56 = vpop.f32.mrb[104].mxu0  ;;  %v2259_v57 = vpop.f32.mrb[101].mxu1 }
 0x25a   : > { %v3186_v48 = vpop.f32.mrb[105].mxu0  ;;  %v2260_v55 = vpop.f32.mrb[102].mxu1  ;;  %v2518_v47 = vld [vmem:[#allocation3 + $0xa0] sm:$0xff] }
 0x25b   : > { %2302 = vst.msk [vmem:[#allocation3 + $0xb0] sm:$0xff] %vm217_vm0, %v2258_v52  ;;  %v3187_v9 = vadd.f32 %v3186_v48, %v3185_v56  ;;  %v2261_v14 = vadd.f32 %v2260_v55, %v2116_v39  ;;  %v3188_v51 = vpop.f32.mrb[106].mxu0  ;;  %2526 = vrot.lane.b32.xlu0 %v2518_v47, %s3303_s15  ;;  %v2262_v53 = vpop.f32.mrb[103].mxu1 }
 0x25c   : > { %v3189_v25 = vpop.f32.mrb[107].mxu0  ;;  %v2519_v29 = vld [vmem:[#allocation3 + $0xa8] sm:$0xff] }
 0x25d   : > { %2303 = vst.msk [vmem:[#allocation3 + $0xb8] sm:$0xff] %vm217_vm0, %v2261_v14  ;;  %v3190_v19 = vadd.f32 %v3189_v25, %v3188_v51  ;;  %2528 = vrot.lane.b32.xlu1 %v2519_v29, %s3303_s15  ;;  %v2121_v23 = vadd.f32 %v3187_v9, %v4005_v49 }
 0x25f   : > { %v2124_v59 = vadd.f32 %v3190_v19, %v4007_v44 }
 0x260   : > { %v2265_v60 = vpop.f32.mrb[104].mxu1 }
 0x261   : > { %v2266_v61 = vadd.f32 %v2265_v60, %v2121_v23  ;;  %v3191_v0 = vpop.f32.mrb[108].mxu0  ;;  %v2267_v4 = vpop.f32.mrb[105].mxu1 }
 0x262   : > { %v3192_v5 = vpop.f32.mrb[109].mxu0  ;;  %v2268_v42 = vpop.f32.mrb[106].mxu1  ;;  %v2520_v8 = vld [vmem:[#allocation3 + $0xb0] sm:$0xff] }
 0x263   : > { %2304 = vst.msk [vmem:[#allocation3 + $0xc0] sm:$0xff] %vm217_vm0, %v2266_v61  ;;  %v3193_v10 = vadd.f32 %v3192_v5, %v3191_v0  ;;  %v2269_v62 = vadd.f32 %v2268_v42, %v2124_v59  ;;  %v3194_v26 = vpop.f32.mrb[110].mxu0  ;;  %2530 = vrot.lane.b32.xlu0 %v2520_v8, %s3303_s15  ;;  %v2270_v31 = vpop.f32.mrb[107].mxu1 }
 0x264   : > { %v3195_v12 = vpop.f32.mrb[111].mxu0  ;;  %v2521_v2 = vld [vmem:[#allocation3 + $0xb8] sm:$0xff] }
 0x265   : > { %2305 = vst.msk [vmem:[#allocation3 + $0xc8] sm:$0xff] %vm217_vm0, %v2269_v62  ;;  %v3196_v49 = vadd.f32 %v3195_v12, %v3194_v26  ;;  %2532 = vrot.lane.b32.xlu1 %v2521_v2, %s3303_s15  ;;  %v2129_v44 = vadd.f32 %v3193_v10, %v4017_v3 }
 0x267   : > { %v2132_v13 = vadd.f32 %v3196_v49, %v4020_v7  ;;  %v2327_v7 = vld [vmem:[#allocation4 + $0x8] sm:$0xff] }
 0x268   : > { %v2273_v16 = vpop.f32.mrb[108].mxu1 }
 0x269   : > { %v2274_v38 = vadd.f32 %v2273_v16, %v2129_v44  ;;  %v2275_v43 = vpop.f32.mrb[109].mxu1 }
 0x26a   : > { %v2276_v17 = vpop.f32.mrb[110].mxu1  ;;  %v2564_v18 = vld [vmem:[#allocation3 + $0xc0] sm:$0xff] }
 0x26b   : > { %2306 = vst.msk [vmem:[#allocation3 + $0xd0] sm:$0xff] %vm217_vm0, %v2274_v38  ;;  %v2277_v20 = vadd.f32 %v2276_v17, %v2132_v13  ;;  %2572 = vrot.lane.b32.xlu0 %v2564_v18, %s3304_s16  ;;  %v2278_v21 = vpop.f32.mrb[111].mxu1 }
 0x26c   : > { %v2565_v22 = vld [vmem:[#allocation3 + $0xc8] sm:$0xff] }
 0x26d   : > { %2307 = vst.msk [vmem:[#allocation3 + $0xd8] sm:$0xff] %vm217_vm0, %v2277_v20  ;;  %2574 = vrot.lane.b32.xlu1 %v2565_v22, %s3304_s16  ;;  %vm2500_vm0 = vcmask 1048032  }
 0x272   : > { %v2566_v24 = vld [vmem:[#allocation3 + $0xd0] sm:$0xff] }
 0x273   : > { %2576 = vrot.lane.b32.xlu0 %v2566_v24, %s3304_s16 }
 0x274   : > { %v2567_v3 = vld [vmem:[#allocation3 + $0xd8] sm:$0xff] }
 0x275   : > { %2578 = vrot.lane.b32.xlu1 %v2567_v3, %s3304_s16 }
 0x28d   : > { %v2343_v33 = vpop.permute.xlu0 %2342 }
 0x28e   : > { %v2354_v28 = vadd.f32 %v2343_v33, %v2326_v27  ;;  %v2355_v37 = vadd.f32 %v2343_v33, %v2327_v7 }
 0x28f   : > { %v2345_v30 = vpop.permute.xlu1 %2344 }
 0x290   : > { %2363 = vst.msk [vmem:[#allocation4] sm:$0xff] %vm2362_vm10, %v2354_v28  ;;  %v2356_v11 = vadd.f32 %v2345_v30, %v2328_v54  ;;  %v2357_v32 = vadd.f32 %v2345_v30, %v2329_v41 }
 0x291   : > { %2365 = vst.msk [vmem:[#allocation4 + $0x8] sm:$0xff] %vm2364_vm11, %v2355_v37 }
 0x292   : > { %2366 = vst.msk [vmem:[#allocation4 + $0x10] sm:$0xff] %vm2362_vm10, %v2356_v11 }
 0x293   : > { %2367 = vst.msk [vmem:[#allocation4 + $0x18] sm:$0xff] %vm2364_vm11, %v2357_v32 }
 0x295   : > { %v2347_v63 = vpop.permute.xlu0 %2346 }
 0x296   : > { %v2358_v35 = vadd.f32 %v2347_v63, %v2330_v58  ;;  %v2359_v36 = vadd.f32 %v2347_v63, %v2331_v34 }
 0x297   : > { %v2349_v45 = vpop.permute.xlu1 %2348  ;;  %v2372_v40 = vld [vmem:[#allocation4] sm:$0xff] }
 0x298   : > { %2368 = vst.msk [vmem:[#allocation4 + $0x20] sm:$0xff] %vm2362_vm10, %v2358_v35  ;;  %v2360_v46 = vadd.f32 %v2349_v45, %v2332_v50  ;;  %v2361_v1 = vadd.f32 %v2349_v45, %v2333_v15  ;;  %v2373_v6 = vld [vmem:[#allocation4 + $0x8] sm:$0xff] }
 0x299   : > { %2369 = vst.msk [vmem:[#allocation4 + $0x28] sm:$0xff] %vm2364_vm11, %v2359_v36  ;;  %v2374_v55 = vld [vmem:[#allocation4 + $0x10] sm:$0xff] }
 0x29a   : > { %2370 = vst.msk [vmem:[#allocation4 + $0x30] sm:$0xff] %vm2362_vm10, %v2360_v46  ;;  %v2375_v57 = vld [vmem:[#allocation4 + $0x18] sm:$0xff] }
 0x29b   : > { %2371 = vst.msk [vmem:[#allocation4 + $0x38] sm:$0xff] %vm2364_vm11, %v2361_v1 }
 0x29d   : > { %v2389_v39 = vpop.permute.xlu0 %2388 }
 0x29e   : > { %v2400_v52 = vadd.f32 %v2389_v39, %v2372_v40  ;;  %v2401_v56 = vadd.f32 %v2389_v39, %v2373_v6 }
 0x29f   : > { %v2391_v48 = vpop.permute.xlu1 %2390  ;;  %v2376_v53 = vld [vmem:[#allocation4 + $0x20] sm:$0xff] }
 0x2a0   : > { %2409 = vst.msk [vmem:[#allocation4] sm:$0xff] %vm2408_vm12, %v2400_v52  ;;  %v2402_v47 = vadd.f32 %v2391_v48, %v2374_v55  ;;  %v2403_v9 = vadd.f32 %v2391_v48, %v2375_v57  ;;  %v2377_v14 = vld [vmem:[#allocation4 + $0x28] sm:$0xff] }
 0x2a1   : > { %2411 = vst.msk [vmem:[#allocation4 + $0x8] sm:$0xff] %vm2410_vm13, %v2401_v56  ;;  %v2378_v59 = vld [vmem:[#allocation4 + $0x30] sm:$0xff] }
 0x2a2   : > { %2412 = vst.msk [vmem:[#allocation4 + $0x10] sm:$0xff] %vm2408_vm12, %v2402_v47  ;;  %v2379_v19 = vld [vmem:[#allocation4 + $0x38] sm:$0xff] }
 0x2a3   : > { %2413 = vst.msk [vmem:[#allocation4 + $0x18] sm:$0xff] %vm2410_vm13, %v2403_v9 }
 0x2a5   : > { %v2393_v51 = vpop.permute.xlu0 %2392 }
 0x2a6   : > { %v2404_v25 = vadd.f32 %v2393_v51, %v2376_v53  ;;  %v2405_v29 = vadd.f32 %v2393_v51, %v2377_v14 }
 0x2a7   : > { %v2395_v23 = vpop.permute.xlu1 %2394  ;;  %v2418_v5 = vld [vmem:[#allocation4] sm:$0xff] }
 0x2a8   : > { %2414 = vst.msk [vmem:[#allocation4 + $0x20] sm:$0xff] %vm2408_vm12, %v2404_v25  ;;  %v2406_v60 = vadd.f32 %v2395_v23, %v2378_v59  ;;  %v2407_v61 = vadd.f32 %v2395_v23, %v2379_v19  ;;  %v2419_v0 = vld [vmem:[#allocation4 + $0x8] sm:$0xff] }
 0x2a9   : > { %2415 = vst.msk [vmem:[#allocation4 + $0x28] sm:$0xff] %vm2410_vm13, %v2405_v29  ;;  %v2420_v26 = vld [vmem:[#allocation4 + $0x10] sm:$0xff] }
 0x2aa   : > { %2416 = vst.msk [vmem:[#allocation4 + $0x30] sm:$0xff] %vm2408_vm12, %v2406_v60  ;;  %v2421_v10 = vld [vmem:[#allocation4 + $0x18] sm:$0xff] }
 0x2ab   : > { %2417 = vst.msk [vmem:[#allocation4 + $0x38] sm:$0xff] %vm2410_vm13, %v2407_v61 }
 0x2ad   : > { %v2435_v4 = vpop.permute.xlu0 %2434 }
 0x2ae   : > { %v2446_v42 = vadd.f32 %v2435_v4, %v2418_v5  ;;  %v2447_v8 = vadd.f32 %v2435_v4, %v2419_v0 }
 0x2af   : > { %v2437_v62 = vpop.permute.xlu1 %2436  ;;  %v2422_v44 = vld [vmem:[#allocation4 + $0x20] sm:$0xff] }
 0x2b0   : > { %2455 = vst.msk [vmem:[#allocation4] sm:$0xff] %vm2454_vm14, %v2446_v42  ;;  %v2448_v31 = vadd.f32 %v2437_v62, %v2420_v26  ;;  %v2449_v12 = vadd.f32 %v2437_v62, %v2421_v10  ;;  %v2423_v2 = vld [vmem:[#allocation4 + $0x28] sm:$0xff] }
 0x2b1   : > { %2457 = vst.msk [vmem:[#allocation4 + $0x8] sm:$0xff] %vm2456_vm15, %v2447_v8  ;;  %v2424_v17 = vld [vmem:[#allocation4 + $0x30] sm:$0xff] }
 0x2b2   : > { %2458 = vst.msk [vmem:[#allocation4 + $0x10] sm:$0xff] %vm2454_vm14, %v2448_v31  ;;  %v2425_v38 = vld [vmem:[#allocation4 + $0x38] sm:$0xff] }
 0x2b3   : > { %2459 = vst.msk [vmem:[#allocation4 + $0x18] sm:$0xff] %vm2456_vm15, %v2449_v12 }
 0x2b5   : > { %v2439_v49 = vpop.permute.xlu0 %2438 }
 0x2b6   : > { %v2450_v13 = vadd.f32 %v2439_v49, %v2422_v44  ;;  %v2451_v16 = vadd.f32 %v2439_v49, %v2423_v2 }
 0x2b7   : > { %v2441_v43 = vpop.permute.xlu1 %2440  ;;  %v2464_v24 = vld [vmem:[#allocation4] sm:$0xff] }
 0x2b8   : > { %2460 = vst.msk [vmem:[#allocation4 + $0x20] sm:$0xff] %vm2454_vm14, %v2450_v13  ;;  %v2452_v18 = vadd.f32 %v2441_v43, %v2424_v17  ;;  %v2453_v20 = vadd.f32 %v2441_v43, %v2425_v38  ;;  %v2465_v21 = vld [vmem:[#allocation4 + $0x8] sm:$0xff] }
 0x2b9   : > { %2461 = vst.msk [vmem:[#allocation4 + $0x28] sm:$0xff] %vm2456_vm15, %v2451_v16  ;;  %v2466_v41 = vld [vmem:[#allocation4 + $0x10] sm:$0xff] }
 0x2ba   : > { %2462 = vst.msk [vmem:[#allocation4 + $0x30] sm:$0xff] %vm2454_vm14, %v2452_v18  ;;  %v2467_v27 = vld [vmem:[#allocation4 + $0x18] sm:$0xff] }
 0x2bb   : > { %2463 = vst.msk [vmem:[#allocation4 + $0x38] sm:$0xff] %vm2456_vm15, %v2453_v20 }
 0x2bd   : > { %v2481_v22 = vpop.permute.xlu0 %2480 }
 0x2be   : > { %v2492_v3 = vadd.f32 %v2481_v22, %v2464_v24  ;;  %v2493_v7 = vadd.f32 %v2481_v22, %v2465_v21 }
 0x2bf   : > { %v2483_v33 = vpop.permute.xlu1 %2482  ;;  %v2468_v11 = vld [vmem:[#allocation4 + $0x20] sm:$0xff] }
 0x2c0   : > { %2501 = vst.msk [vmem:[#allocation4] sm:$0xff] %vm2500_vm0, %v2492_v3  ;;  %v2494_v54 = vadd.f32 %v2483_v33, %v2466_v41  ;;  %v2495_v28 = vadd.f32 %v2483_v33, %v2467_v27  ;;  %v2469_v37 = vld [vmem:[#allocation4 + $0x28] sm:$0xff] }
 0x2c1   : > { %2503 = vst.msk [vmem:[#allocation4 + $0x8] sm:$0xff] %vm2502_vm1, %v2493_v7  ;;  %v2470_v15 = vld [vmem:[#allocation4 + $0x30] sm:$0xff] }
 0x2c2   : > { %2504 = vst.msk [vmem:[#allocation4 + $0x10] sm:$0xff] %vm2500_vm0, %v2494_v54  ;;  %v2471_v58 = vld [vmem:[#allocation4 + $0x38] sm:$0xff] }
 0x2c3   : > { %2505 = vst.msk [vmem:[#allocation4 + $0x18] sm:$0xff] %vm2502_vm1, %v2495_v28 }
 0x2c5   : > { %v2485_v30 = vpop.permute.xlu0 %2484 }
 0x2c6   : > { %v2496_v32 = vadd.f32 %v2485_v30, %v2468_v11  ;;  %v2497_v34 = vadd.f32 %v2485_v30, %v2469_v37 }
 0x2c7   : > { %v2487_v63 = vpop.permute.xlu1 %2486  ;;  %v2510_v46 = vld [vmem:[#allocation4] sm:$0xff] }
 0x2c8   : > { %2506 = vst.msk [vmem:[#allocation4 + $0x20] sm:$0xff] %vm2500_vm0, %v2496_v32  ;;  %v2498_v50 = vadd.f32 %v2487_v63, %v2470_v15  ;;  %v2499_v35 = vadd.f32 %v2487_v63, %v2471_v58  ;;  %v2511_v36 = vld [vmem:[#allocation4 + $0x8] sm:$0xff] }
 0x2c9   : > { %2507 = vst.msk [vmem:[#allocation4 + $0x28] sm:$0xff] %vm2502_vm1, %v2497_v34  ;;  %v2512_v52 = vld [vmem:[#allocation4 + $0x10] sm:$0xff] }
 0x2ca   : > { %2508 = vst.msk [vmem:[#allocation4 + $0x30] sm:$0xff] %vm2500_vm0, %v2498_v50  ;;  %v2513_v39 = vld [vmem:[#allocation4 + $0x18] sm:$0xff] }
 0x2cb   : > { %2509 = vst.msk [vmem:[#allocation4 + $0x38] sm:$0xff] %vm2502_vm1, %v2499_v35 }
 0x2cd   : > { %v2527_v45 = vpop.permute.xlu0 %2526 }
 0x2ce   : > { %v2538_v1 = vadd.f32 %v2527_v45, %v2510_v46  ;;  %v2539_v6 = vadd.f32 %v2527_v45, %v2511_v36 }
 0x2cf   : > { %v2529_v40 = vpop.permute.xlu1 %2528  ;;  %v2514_v47 = vld [vmem:[#allocation4 + $0x20] sm:$0xff] }
 0x2d0   : > { %2547 = vst.msk [vmem:[#allocation4] sm:$0xff] %vm2546_vm2, %v2538_v1  ;;  %v2540_v56 = vadd.f32 %v2529_v40, %v2512_v52  ;;  %v2541_v57 = vadd.f32 %v2529_v40, %v2513_v39  ;;  %v2515_v48 = vld [vmem:[#allocation4 + $0x28] sm:$0xff] }
 0x2d1   : > { %2549 = vst.msk [vmem:[#allocation4 + $0x8] sm:$0xff] %vm2548_vm3, %v2539_v6  ;;  %v2516_v25 = vld [vmem:[#allocation4 + $0x30] sm:$0xff] }
 0x2d2   : > { %2550 = vst.msk [vmem:[#allocation4 + $0x10] sm:$0xff] %vm2546_vm2, %v2540_v56  ;;  %v2517_v51 = vld [vmem:[#allocation4 + $0x38] sm:$0xff] }
 0x2d3   : > { %2551 = vst.msk [vmem:[#allocation4 + $0x18] sm:$0xff] %vm2548_vm3, %v2541_v57 }
 0x2d5   : > { %v2531_v55 = vpop.permute.xlu0 %2530 }
 0x2d6   : > { %v2542_v9 = vadd.f32 %v2531_v55, %v2514_v47  ;;  %v2543_v14 = vadd.f32 %v2531_v55, %v2515_v48 }
 0x2d7   : > { %v2533_v53 = vpop.permute.xlu1 %2532  ;;  %v2556_v60 = vld [vmem:[#allocation4] sm:$0xff] }
 0x2d8   : > { %2552 = vst.msk [vmem:[#allocation4 + $0x20] sm:$0xff] %vm2546_vm2, %v2542_v9  ;;  %v2544_v29 = vadd.f32 %v2533_v53, %v2516_v25  ;;  %v2545_v19 = vadd.f32 %v2533_v53, %v2517_v51  ;;  %v2557_v23 = vld [vmem:[#allocation4 + $0x8] sm:$0xff] }
 0x2d9   : > { %2553 = vst.msk [vmem:[#allocation4 + $0x28] sm:$0xff] %vm2548_vm3, %v2543_v14  ;;  %v2558_v42 = vld [vmem:[#allocation4 + $0x10] sm:$0xff] }
 0x2da   : > { %2554 = vst.msk [vmem:[#allocation4 + $0x30] sm:$0xff] %vm2546_vm2, %v2544_v29  ;;  %v2559_v4 = vld [vmem:[#allocation4 + $0x18] sm:$0xff] }
 0x2db   : > { %2555 = vst.msk [vmem:[#allocation4 + $0x38] sm:$0xff] %vm2548_vm3, %v2545_v19 }
 0x2dd   : > { %v2573_v59 = vpop.permute.xlu0 %2572 }
 0x2de   : > { %v2584_v61 = vadd.f32 %v2573_v59, %v2556_v60  ;;  %v2585_v0 = vadd.f32 %v2573_v59, %v2557_v23 }
 0x2df   : > { %v2575_v5 = vpop.permute.xlu1 %2574  ;;  %v2560_v31 = vld [vmem:[#allocation4 + $0x20] sm:$0xff] }
 0x2e0   : > { %2593 = vst.msk [vmem:[#allocation4] sm:$0xff] %vm2592_vm4, %v2584_v61  ;;  %v2586_v8 = vadd.f32 %v2575_v5, %v2558_v42  ;;  %v2587_v10 = vadd.f32 %v2575_v5, %v2559_v4  ;;  %v2561_v62 = vld [vmem:[#allocation4 + $0x28] sm:$0xff] }
 0x2e1   : > { %2595 = vst.msk [vmem:[#allocation4 + $0x8] sm:$0xff] %vm2594_vm5, %v2585_v0  ;;  %v2562_v38 = vld [vmem:[#allocation4 + $0x30] sm:$0xff] }
 0x2e2   : > { %2596 = vst.msk [vmem:[#allocation4 + $0x10] sm:$0xff] %vm2592_vm4, %v2586_v8  ;;  %v2563_v49 = vld [vmem:[#allocation4 + $0x38] sm:$0xff] }
 0x2e3   : > { %2597 = vst.msk [vmem:[#allocation4 + $0x18] sm:$0xff] %vm2594_vm5, %v2587_v10 }
 0x2e5   : > { %v2577_v26 = vpop.permute.xlu0 %2576 }
 0x2e6   : > { %v2588_v12 = vadd.f32 %v2577_v26, %v2560_v31  ;;  %v2589_v2 = vadd.f32 %v2577_v26, %v2561_v62 }
 0x2e7   : > { %v2602_v44 = vld [vmem:[#allocation4] sm:$0xff]  ;;  %v2579_v16 = vpop.permute.xlu1 %2578 }
 0x2e8   : > { %v2603_v13 = vld [vmem:[#allocation4 + $0x8] sm:$0xff]  ;;  %vm2610_vm6 = vcmp.gt.f32.partialorder %v2602_v44, 0.0  ;;  %v2618_v43 = vmul.f32 0.622, %v2602_v44  ;;  %2598 = vst.msk [vmem:[#allocation4 + $0x20] sm:$0xff] %vm2592_vm4, %v2588_v12  ;;  %v2590_v21 = vadd.f32 %v2579_v16, %v2562_v38  ;;  %v2591_v22 = vadd.f32 %v2579_v16, %v2563_v49 }
 0x2e9   : > { %vm2611_vm7 = vcmp.gt.f32.partialorder %v2603_v13, 0.0  ;;  %v2619_v17 = vmul.f32 0.622, %v2603_v13  ;;  %2599 = vst.msk [vmem:[#allocation4 + $0x28] sm:$0xff] %vm2594_vm5, %v2589_v2  ;;  %v2604_v18 = vld [vmem:[#allocation4 + $0x10] sm:$0xff] }
 0x2ea   : > { %v2605_v20 = vld [vmem:[#allocation4 + $0x18] sm:$0xff]  ;;  %v2626_v24 = vsel %vm2610_vm6, %v2602_v44, %v2618_v43  ;;  %vm2612_vm9 = vcmp.gt.f32.partialorder %v2604_v18, 0.0  ;;  %v2620_v7 = vmul.f32 0.622, %v2604_v18  ;;  %2600 = vst.msk [vmem:[#allocation4 + $0x30] sm:$0xff] %vm2592_vm4, %v2590_v21 }
 0x2eb   : > { %v2627_v3 = vsel %vm2611_vm7, %v2603_v13, %v2619_v17  ;;  %vm2613_vm10 = vcmp.gt.f32.partialorder %v2605_v20, 0.0  ;;  %2634 = vst [vmem:[%s4137_s20] sm:$0xff] %v2626_v24  ;;  %v2621_v27 = vmul.f32 0.622, %v2605_v20  ;;  %2601 = vst.msk [vmem:[#allocation4 + $0x38] sm:$0xff] %vm2594_vm5, %v2591_v22 }
 0x2ec   : > { %2635 = vst.msk [vmem:[%s4137_s20 + $0x8] sm:$0xff] %vm2318_vm8, %v2627_v3  ;;  %v2628_v33 = vsel %vm2612_vm9, %v2604_v18, %v2620_v7 }
 0x2ed   : > { %v2629_v41 = vsel %vm2613_vm10, %v2605_v20, %v2621_v27  ;;  %2636 = vst [vmem:[%s4137_s20 + $0x10] sm:$0xff] %v2628_v33 }
 0x2ee   : > { %2637 = vst.msk [vmem:[%s4137_s20 + $0x18] sm:$0xff] %vm2318_vm8, %v2629_v41 }
 0x2ef   : > { %v2606_v54 = vld [vmem:[#allocation4 + $0x20] sm:$0xff] }
 0x2f0   : > { %v2607_v28 = vld [vmem:[#allocation4 + $0x28] sm:$0xff]  ;;  %vm2614_vm11 = vcmp.gt.f32.partialorder %v2606_v54, 0.0  ;;  %v2622_v37 = vmul.f32 0.622, %v2606_v54 }
 0x2f1   : > { %vm2615_vm12 = vcmp.gt.f32.partialorder %v2607_v28, 0.0  ;;  %v2623_v30 = vmul.f32 0.622, %v2607_v28  ;;  %v2608_v34 = vld [vmem:[#allocation4 + $0x30] sm:$0xff] }
 0x2f2   : > { %v2630_v11 = vsel %vm2614_vm11, %v2606_v54, %v2622_v37  ;;  %v2609_v58 = vld [vmem:[#allocation4 + $0x38] sm:$0xff]  ;;  %vm2616_vm13 = vcmp.gt.f32.partialorder %v2608_v34, 0.0  ;;  %v2624_v63 = vmul.f32 0.622, %v2608_v34 }
 0x2f3   : > { %v2631_v32 = vsel %vm2615_vm12, %v2607_v28, %v2623_v30  ;;  %2638 = vst [vmem:[%s4137_s20 + $0x20] sm:$0xff] %v2630_v11  ;;  %vm2617_vm14 = vcmp.gt.f32.partialorder %v2609_v58, 0.0  ;;  %v2625_v15 = vmul.f32 0.622, %v2609_v58 }
 0x2f4   : > { %2639 = vst.msk [vmem:[%s4137_s20 + $0x28] sm:$0xff] %vm2318_vm8, %v2631_v32  ;;  %v2632_v50 = vsel %vm2616_vm13, %v2608_v34, %v2624_v63 }
 0x2f5   : > { %v2633_v35 = vsel %vm2617_vm14, %v2609_v58, %v2625_v15  ;;  %2640 = vst [vmem:[%s4137_s20 + $0x30] sm:$0xff] %v2632_v50 }
 0x2f6   : > { %2641 = vst.msk [vmem:[%s4137_s20 + $0x38] sm:$0xff] %vm2318_vm8, %v2633_v35 }
 0x2f7 PF: > { %s12_s9 = sadd.s32 1, %s3289_s9  }
 0x2f8   : > { %p9_p4 = scmp.ge.s32.totalorder %s12_s9, 4  }
 0x2fa   :  { %11 = sbr.rel (!%p9_p4) target bundleno = 1 (0x1), region = 58 }

</bundles_post_ra>
